<compile_context>
chip_gen: v6e
topology: v6e:2x2x1
jax: 0.10.0
libtpu: 0.0.40
codegen_flags: <defaults>
</compile_context>

<pallas_src>
import functools
import math

import jax
import jax.numpy as jnp
from jax.experimental import pallas as pl
from jax.experimental.pallas import tpu as pltpu


# ------------------------------ kernel ------------------------------------ #

def _layernorm(x, gamma, beta, eps):
    mu = jnp.mean(x, axis=-1, keepdims=True)
    xc = x - mu
    var = jnp.mean(xc * xc, axis=-1, keepdims=True)
    inv = jax.lax.rsqrt(var + eps)
    return xc * inv * gamma + beta


def fused_transformer_kernel(
    x_ref, pe_ref, w_in_ref, b_in_ref,
    wqkv_ref, bqkv_ref, wo_ref, vec_ref, w1_ref, b1_ref, w2_ref,
    gf_ref, bf_ref, whead_ref, bhead_ref,
    o_ref,
    *, batch, seq_len, nhead, num_layers, eps,
):
    D = w_in_ref.shape[1]
    dh = D // nhead
    scale = 1.0 / math.sqrt(dh)
    S = seq_len
    B = batch
    H = nhead
    G = B * H                      # fused (batch, head) einsum batch dim

    # ---- input Linear + positional encoding (token-major (B*S, D) slab) ----
    h = (jnp.dot(x_ref[...], w_in_ref[...], preferred_element_type=jnp.float32)
         + b_in_ref[...] + pe_ref[...])

    # ---- encoder layers (post-norm, ReLU FFN) ------------------------------
    for l in range(num_layers):
        wqkv = wqkv_ref[l]         # (H, D, 3*dh)  fused q|k|v proj, per head
        bqkv = bqkv_ref[l]         # (H, 1, 3*dh)
        wo = wo_ref[l]             # (H, dh, D)    out-proj rows, per head
        vec = vec_ref[l]           # (6, D): bo, g1, be1, b2, g2, be2
        bo, g1, be1 = vec[0:1, :], vec[1:2, :], vec[2:3, :]
        b2, g2, be2 = vec[3:4, :], vec[4:5, :], vec[5:6, :]
        w1 = w1_ref[l]             # (D, Fff)
        b1 = b1_ref[l]             # (1, Fff)
        w2 = w2_ref[l]             # (Fff, D)

        # -- multi-head self-attention, batched over (B * H) in one shot ----
        xg = jnp.broadcast_to(h.reshape(B, 1, S, D),
                              (B, H, S, D)).reshape(G, S, D)
        wqkv_g = jnp.broadcast_to(wqkv[None],
                                  (B, H, D, 3 * dh)).reshape(G, D, 3 * dh)
        bqkv_g = jnp.broadcast_to(bqkv[None],
                                  (B, H, 1, 3 * dh)).reshape(G, 1, 3 * dh)
        wo_g = jnp.broadcast_to(wo[None], (B, H, dh, D)).reshape(G, dh, D)

        qkv = jnp.einsum("gsd,gde->gse", xg, wqkv_g,
                         preferred_element_type=jnp.float32) + bqkv_g
        q = qkv[:, :, 0:dh]
        k = qkv[:, :, dh:2 * dh]
        v = qkv[:, :, 2 * dh:3 * dh]

        s = jnp.einsum("gqe,gke->gqk", q, k,
                       preferred_element_type=jnp.float32) * scale
        s = s - jnp.max(s, axis=-1, keepdims=True)
        p = jnp.exp(s)
        p = p * pl.reciprocal(jnp.sum(p, axis=-1, keepdims=True), approx=True)

        og = jnp.einsum("gqk,gke->gqe", p, v,
                        preferred_element_type=jnp.float32)      # (G, S, dh)
        proj = jnp.einsum("gse,ged->gsd", og, wo_g,
                          preferred_element_type=jnp.float32)    # (G, S, D)
        attn = (jnp.sum(proj.reshape(B, H, S, D), axis=1)
                .reshape(B * S, D) + bo)                         # (B*S, D)

        h1 = _layernorm(h + attn, g1, be1, eps)
        ff = jnp.maximum(
            jnp.dot(h1, w1, preferred_element_type=jnp.float32) + b1, 0.0)
        ff = jnp.dot(ff, w2, preferred_element_type=jnp.float32) + b2
        h = _layernorm(h1 + ff, g2, be2, eps)

    # ---- final encoder LayerNorm -------------------------------------------
    h = _layernorm(h, gf_ref[...], bf_ref[...], eps)

    # ---- classification head (Flatten + Linear), fully in VMEM -------------
    # w_head (S*D, C) is pre-reshaped to (S, D, C); flatten order matches
    # nn.Flatten on a (B, S, D) tensor (index = s*D + d).
    h3 = h.reshape(B, S, D)
    C = o_ref.shape[1]
    acc = jnp.zeros((B, C), jnp.float32)
    for s_pos in range(S):
        acc = acc + jnp.dot(h3[:, s_pos, :], whead_ref[s_pos],
                            preferred_element_type=jnp.float32)
    o_ref[...] = acc + bhead_ref[...]


# ------------------------------ wrapper ------------------------------------ #

def classification_transformer_forward(x, params, pe, nhead, eps=1e-5):
    B, S, F = x.shape
    L = params["wqkv"].shape[0]
    C = params["b_head"].shape[1]

    x2d = x.reshape(B * S, F)          # batch-major token slab
    pe2d = jnp.tile(pe, (B, 1))        # (B*S, D) positional encoding

    kern = functools.partial(
        fused_transformer_kernel,
        batch=B, seq_len=S, nhead=nhead, num_layers=L, eps=eps)

    vmem = pl.BlockSpec(memory_space=pltpu.MemorySpace.VMEM)
    return pl.pallas_call(
        kern,
        out_shape=jax.ShapeDtypeStruct((B, C), jnp.float32),
        in_specs=[vmem] * 15,
        out_specs=vmem,
    )(x2d, pe2d, params["w_in"], params["b_in"],
      params["wqkv"], params["bqkv"], params["wo"], params["vec"],
      params["w1"], params["b1"], params["w2"],
      params["g_f"], params["b_f"], params["w_head"], params["b_head"])


# --------------------------- params & helpers ------------------------------ #

def sinusoidal_pe(seq_len, d_model):
    pos = jnp.arange(seq_len, dtype=jnp.float32)[:, None]
    div = jnp.exp(jnp.arange(0, d_model, 2, dtype=jnp.float32)
                  * (-math.log(10000.0) / d_model))
    pe = jnp.zeros((seq_len, d_model), jnp.float32)
    pe = pe.at[:, 0::2].set(jnp.sin(pos * div))
    pe = pe.at[:, 1::2].set(jnp.cos(pos * div))
    return pe


def _xavier(key, fan_in, fan_out):
    lim = math.sqrt(6.0 / (fan_in + fan_out))
    return jax.random.uniform(key, (fan_in, fan_out), jnp.float32, -lim, lim)


def init_params(key, seq_len, in_features, num_classes, d_model, nhead,
                num_layers, dim_ff):
    keys = iter(jax.random.split(key, 4 + 8 * num_layers))
    nxt = lambda: next(keys)
    dh = d_model // nhead

    def bias(k, n):
        return 0.05 * jax.random.normal(k, (1, n), jnp.float32)

    params = {
        "w_in": _xavier(nxt(), in_features, d_model),
        "b_in": bias(nxt(), d_model),
        "w_head": _xavier(nxt(), d_model * seq_len, num_classes).reshape(
            seq_len, d_model, num_classes),
        "b_head": bias(nxt(), num_classes),
        "g_f": jnp.ones((1, d_model), jnp.float32),
        "b_f": jnp.zeros((1, d_model), jnp.float32),
    }

    wqkv_l, bqkv_l, wo_l, vec_l, w1_l, b1_l, w2_l = [], [], [], [], [], [], []
    for _ in range(num_layers):
        wq = _xavier(nxt(), d_model, d_model)
        wk = _xavier(nxt(), d_model, d_model)
        wv = _xavier(nxt(), d_model, d_model)
        wo = _xavier(nxt(), d_model, d_model)
        bq = jnp.zeros((1, d_model), jnp.float32)
        bk = jnp.zeros((1, d_model), jnp.float32)
        bv = jnp.zeros((1, d_model), jnp.float32)
        bo = jnp.zeros((1, d_model), jnp.float32)
        g1 = jnp.ones((1, d_model), jnp.float32)
        be1 = jnp.zeros((1, d_model), jnp.float32)
        g2 = jnp.ones((1, d_model), jnp.float32)
        be2 = jnp.zeros((1, d_model), jnp.float32)
        w1 = _xavier(nxt(), d_model, dim_ff)
        b1 = bias(nxt(), dim_ff)
        w2 = _xavier(nxt(), dim_ff, d_model)
        b2 = bias(nxt(), d_model)

        # head-batched fused q|k|v projection weights: (H, D, 3*dh)
        wh, bh = [], []
        for h in range(nhead):
            sl = slice(h * dh, (h + 1) * dh)
            wh.append(jnp.concatenate([wq[:, sl], wk[:, sl], wv[:, sl]], axis=1))
            bh.append(jnp.concatenate([bq[:, sl], bk[:, sl], bv[:, sl]], axis=1))
        wqkv_l.append(jnp.stack(wh, axis=0))
        bqkv_l.append(jnp.stack(bh, axis=0))
        wo_l.append(wo.reshape(nhead, dh, d_model))            # (H, dh, D)
        vec_l.append(jnp.concatenate([bo, g1, be1, b2, g2, be2], axis=0))
        w1_l.append(w1)
        b1_l.append(b1)
        w2_l.append(w2)

    params["wqkv"] = jnp.stack(wqkv_l, axis=0)   # (L, H, D, 3*dh)
    params["bqkv"] = jnp.stack(bqkv_l, axis=0)   # (L, H, 1, 3*dh)
    params["wo"] = jnp.stack(wo_l, axis=0)       # (L, H, dh, D)
    params["vec"] = jnp.stack(vec_l, axis=0)     # (L, 6, D)
    params["w1"] = jnp.stack(w1_l, axis=0)       # (L, D, Fff)
    params["b1"] = jnp.stack(b1_l, axis=0)       # (L, 1, Fff)
    params["w2"] = jnp.stack(w2_l, axis=0)       # (L, Fff, D)
    return params


# --------------------------------- main ------------------------------------ #

if __name__ == "__main__":
    # (batch, seq_len, in_features) => Transformer => (batch, num_classes)
    B, S, F_IN, C = 2, 8, 16, 4
    D_MODEL, NHEAD, N_LAYERS, DIM_FF = 32, 4, 2, 64

    key = jax.random.PRNGKey(0)
    kx, kp = jax.random.split(key)
    x = jax.random.normal(kx, (B, S, F_IN), jnp.float32)

    params = init_params(kp, S, F_IN, C, D_MODEL, NHEAD, N_LAYERS, DIM_FF)
    pe = sinusoidal_pe(S, D_MODEL)

    y = classification_transformer_forward(x, params, pe, NHEAD)
    y = jax.block_until_ready(y)
    assert y.shape == (B, C) and y.dtype == jnp.float32
    print("KERNEL_OK")
</pallas_src>

<mosaic_0001>
module attributes {stable_mosaic.version = 11 : i64} {
  func.func @fused_transformer_kernel(%arg0: memref<16x16xf32, #tpu.memory_space<vmem>>, %arg1: memref<16x32xf32, #tpu.memory_space<vmem>>, %arg2: memref<16x32xf32, #tpu.memory_space<vmem>>, %arg3: memref<1x32xf32, #tpu.memory_space<vmem>>, %arg4: memref<2x4x32x24xf32, #tpu.memory_space<vmem>>, %arg5: memref<2x4x1x24xf32, #tpu.memory_space<vmem>>, %arg6: memref<2x4x8x32xf32, #tpu.memory_space<vmem>>, %arg7: memref<2x6x32xf32, #tpu.memory_space<vmem>>, %arg8: memref<2x32x64xf32, #tpu.memory_space<vmem>>, %arg9: memref<2x1x64xf32, #tpu.memory_space<vmem>>, %arg10: memref<2x64x32xf32, #tpu.memory_space<vmem>>, %arg11: memref<1x32xf32, #tpu.memory_space<vmem>>, %arg12: memref<1x32xf32, #tpu.memory_space<vmem>>, %arg13: memref<8x32x4xf32, #tpu.memory_space<vmem>>, %arg14: memref<1x4xf32, #tpu.memory_space<vmem>>, %arg15: memref<2x4xf32, #tpu.memory_space<vmem>>) attributes {dimension_semantics = [], scalar_prefetch = 0 : i64, scratch_operands = 0 : i64, tpu.core_type = #tpu.core_type<tc>} {
    %c0 = arith.constant 0 : index
    %c0_0 = arith.constant 0 : index
    %0 = vector.load %arg0[%c0, %c0_0] : memref<16x16xf32, #tpu.memory_space<vmem>>, vector<16x16xf32>
    %c0_1 = arith.constant 0 : index
    %c0_2 = arith.constant 0 : index
    %1 = vector.load %arg2[%c0_1, %c0_2] : memref<16x32xf32, #tpu.memory_space<vmem>>, vector<16x32xf32>
    %cst = arith.constant dense<0.000000e+00> : vector<16x32xf32>
    %2 = tpu.matmul %0, %1, %cst {dimension_numbers = #tpu.dot_dimension_numbers<[1], [0], [0], [1], [0, 0, 1, 1], [], []>} : vector<16x16xf32>, vector<16x32xf32>, vector<16x32xf32> -> vector<16x32xf32>
    %c0_3 = arith.constant 0 : index
    %c0_4 = arith.constant 0 : index
    %3 = vector.load %arg3[%c0_3, %c0_4] : memref<1x32xf32, #tpu.memory_space<vmem>>, vector<1x32xf32>
    %4 = vector.broadcast %3 : vector<1x32xf32> to vector<16x32xf32>
    %5 = arith.addf %2, %4 : vector<16x32xf32>
    %c0_5 = arith.constant 0 : index
    %c0_6 = arith.constant 0 : index
    %6 = vector.load %arg1[%c0_5, %c0_6] : memref<16x32xf32, #tpu.memory_space<vmem>>, vector<16x32xf32>
    %7 = arith.addf %5, %6 : vector<16x32xf32>
    %c0_7 = arith.constant 0 : index
    %c0_8 = arith.constant 0 : index
    %c0_9 = arith.constant 0 : index
    %c0_10 = arith.constant 0 : index
    %8 = vector.load %arg4[%c0_7, %c0_8, %c0_9, %c0_10] : memref<2x4x32x24xf32, #tpu.memory_space<vmem>>, vector<1x4x32x24xf32>
    %9 = vector.shape_cast %8 : vector<1x4x32x24xf32> to vector<4x32x24xf32>
    %c0_11 = arith.constant 0 : index
    %c0_12 = arith.constant 0 : index
    %c0_13 = arith.constant 0 : index
    %c0_14 = arith.constant 0 : index
    %10 = vector.load %arg5[%c0_11, %c0_12, %c0_13, %c0_14] : memref<2x4x1x24xf32, #tpu.memory_space<vmem>>, vector<1x4x1x24xf32>
    %11 = vector.shape_cast %10 : vector<1x4x1x24xf32> to vector<4x1x24xf32>
    %c0_15 = arith.constant 0 : index
    %c0_16 = arith.constant 0 : index
    %c0_17 = arith.constant 0 : index
    %c0_18 = arith.constant 0 : index
    %12 = vector.load %arg6[%c0_15, %c0_16, %c0_17, %c0_18] : memref<2x4x8x32xf32, #tpu.memory_space<vmem>>, vector<1x4x8x32xf32>
    %13 = vector.shape_cast %12 : vector<1x4x8x32xf32> to vector<4x8x32xf32>
    %c0_19 = arith.constant 0 : index
    %c0_20 = arith.constant 0 : index
    %c0_21 = arith.constant 0 : index
    %14 = vector.load %arg7[%c0_19, %c0_20, %c0_21] : memref<2x6x32xf32, #tpu.memory_space<vmem>>, vector<1x6x32xf32>
    %15 = vector.shape_cast %14 : vector<1x6x32xf32> to vector<6x32xf32>
    %16 = vector.extract_strided_slice %15 {offsets = [0, 0], sizes = [1, 32], strides = [1, 1]} : vector<6x32xf32> to vector<1x32xf32>
    %17 = vector.extract_strided_slice %15 {offsets = [1, 0], sizes = [1, 32], strides = [1, 1]} : vector<6x32xf32> to vector<1x32xf32>
    %18 = vector.extract_strided_slice %15 {offsets = [2, 0], sizes = [1, 32], strides = [1, 1]} : vector<6x32xf32> to vector<1x32xf32>
    %19 = vector.extract_strided_slice %15 {offsets = [3, 0], sizes = [1, 32], strides = [1, 1]} : vector<6x32xf32> to vector<1x32xf32>
    %20 = vector.extract_strided_slice %15 {offsets = [4, 0], sizes = [1, 32], strides = [1, 1]} : vector<6x32xf32> to vector<1x32xf32>
    %21 = vector.extract_strided_slice %15 {offsets = [5, 0], sizes = [1, 32], strides = [1, 1]} : vector<6x32xf32> to vector<1x32xf32>
    %c0_22 = arith.constant 0 : index
    %c0_23 = arith.constant 0 : index
    %c0_24 = arith.constant 0 : index
    %22 = vector.load %arg8[%c0_22, %c0_23, %c0_24] : memref<2x32x64xf32, #tpu.memory_space<vmem>>, vector<1x32x64xf32>
    %23 = vector.shape_cast %22 : vector<1x32x64xf32> to vector<32x64xf32>
    %c0_25 = arith.constant 0 : index
    %c0_26 = arith.constant 0 : index
    %c0_27 = arith.constant 0 : index
    %24 = vector.load %arg9[%c0_25, %c0_26, %c0_27] : memref<2x1x64xf32, #tpu.memory_space<vmem>>, vector<1x1x64xf32>
    %25 = vector.shape_cast %24 : vector<1x1x64xf32> to vector<1x64xf32>
    %c0_28 = arith.constant 0 : index
    %c0_29 = arith.constant 0 : index
    %c0_30 = arith.constant 0 : index
    %26 = vector.load %arg10[%c0_28, %c0_29, %c0_30] : memref<2x64x32xf32, #tpu.memory_space<vmem>>, vector<1x64x32xf32>
    %27 = vector.shape_cast %26 : vector<1x64x32xf32> to vector<64x32xf32>
    %28 = vector.shape_cast %7 : vector<16x32xf32> to vector<2x1x8x32xf32>
    %29 = vector.shape_cast %28 : vector<2x1x8x32xf32> to vector<2x1x8x32xf32>
    %30 = vector.broadcast %29 : vector<2x1x8x32xf32> to vector<2x4x8x32xf32>
    %31 = vector.shape_cast %30 : vector<2x4x8x32xf32> to vector<8x8x32xf32>
    %32 = vector.shape_cast %9 : vector<4x32x24xf32> to vector<1x4x32x24xf32>
    %33 = vector.shape_cast %32 : vector<1x4x32x24xf32> to vector<1x4x32x24xf32>
    %34 = vector.broadcast %33 : vector<1x4x32x24xf32> to vector<2x4x32x24xf32>
    %35 = vector.shape_cast %34 : vector<2x4x32x24xf32> to vector<8x32x24xf32>
    %36 = vector.shape_cast %11 : vector<4x1x24xf32> to vector<1x4x1x24xf32>
    %37 = vector.shape_cast %36 : vector<1x4x1x24xf32> to vector<1x4x1x24xf32>
    %38 = vector.broadcast %37 : vector<1x4x1x24xf32> to vector<2x4x1x24xf32>
    %39 = vector.shape_cast %38 : vector<2x4x1x24xf32> to vector<8x1x24xf32>
    %40 = vector.shape_cast %13 : vector<4x8x32xf32> to vector<1x4x8x32xf32>
    %41 = vector.shape_cast %40 : vector<1x4x8x32xf32> to vector<1x4x8x32xf32>
    %42 = vector.broadcast %41 : vector<1x4x8x32xf32> to vector<2x4x8x32xf32>
    %43 = vector.shape_cast %42 : vector<2x4x8x32xf32> to vector<8x8x32xf32>
    "tpu.trace_start"() <{level = 10 : i32, message = "gsd,gde->gse"}> : () -> ()
    %cst_31 = arith.constant dense<0.000000e+00> : vector<8x8x24xf32>
    %44 = tpu.matmul %31, %35, %cst_31 {dimension_numbers = #tpu.dot_dimension_numbers<[2], [1], [1], [2], [0, 0, 0, 1, 1, 2], [0], [0]>} : vector<8x8x32xf32>, vector<8x32x24xf32>, vector<8x8x24xf32> -> vector<8x8x24xf32>
    "tpu.trace_stop"() : () -> ()
    %45 = vector.broadcast %39 : vector<8x1x24xf32> to vector<8x8x24xf32>
    %46 = arith.addf %44, %45 : vector<8x8x24xf32>
    %47 = vector.extract_strided_slice %46 {offsets = [0, 0, 0], sizes = [8, 8, 8], strides = [1, 1, 1]} : vector<8x8x24xf32> to vector<8x8x8xf32>
    %48 = vector.extract_strided_slice %46 {offsets = [0, 0, 8], sizes = [8, 8, 8], strides = [1, 1, 1]} : vector<8x8x24xf32> to vector<8x8x8xf32>
    %49 = vector.extract_strided_slice %46 {offsets = [0, 0, 16], sizes = [8, 8, 8], strides = [1, 1, 1]} : vector<8x8x24xf32> to vector<8x8x8xf32>
    "tpu.trace_start"() <{level = 10 : i32, message = "gqe,gke->gqk"}> : () -> ()
    %cst_32 = arith.constant dense<0.000000e+00> : vector<8x8x8xf32>
    %50 = tpu.matmul %47, %48, %cst_32 {dimension_numbers = #tpu.dot_dimension_numbers<[2], [2], [1], [1], [0, 0, 0, 1, 1, 1], [0], [0]>} : vector<8x8x8xf32>, vector<8x8x8xf32>, vector<8x8x8xf32> -> vector<8x8x8xf32>
    "tpu.trace_stop"() : () -> ()
    %cst_33 = arith.constant 0.353553385 : f32
    %51 = vector.broadcast %cst_33 : f32 to vector<8x8x8xf32>
    %52 = arith.mulf %50, %51 : vector<8x8x8xf32>
    %cst_34 = arith.constant dense<0xFF800000> : vector<8x8xf32>
    %53 = vector.multi_reduction <maximumf>, %52, %cst_34 [2] : vector<8x8x8xf32> to vector<8x8xf32>
    %54 = vector.shape_cast %53 : vector<8x8xf32> to vector<8x8x1xf32>
    %55 = vector.broadcast %54 : vector<8x8x1xf32> to vector<8x8x8xf32>
    %56 = arith.subf %52, %55 : vector<8x8x8xf32>
    %57 = math.exp %56 : vector<8x8x8xf32>
    %cst_35 = arith.constant dense<0.000000e+00> : vector<8x8xf32>
    %58 = vector.multi_reduction <add>, %57, %cst_35 [2] : vector<8x8x8xf32> to vector<8x8xf32>
    %59 = vector.shape_cast %58 : vector<8x8xf32> to vector<8x8x1xf32>
    %60 = tpu.reciprocal %59 {approx = true} : vector<8x8x1xf32> -> vector<8x8x1xf32>
    %61 = vector.broadcast %60 : vector<8x8x1xf32> to vector<8x8x8xf32>
    %62 = arith.mulf %57, %61 : vector<8x8x8xf32>
    "tpu.trace_start"() <{level = 10 : i32, message = "gqk,gke->gqe"}> : () -> ()
    %cst_36 = arith.constant dense<0.000000e+00> : vector<8x8x8xf32>
    %63 = tpu.matmul %62, %49, %cst_36 {dimension_numbers = #tpu.dot_dimension_numbers<[2], [1], [1], [2], [0, 0, 0, 1, 1, 2], [0], [0]>} : vector<8x8x8xf32>, vector<8x8x8xf32>, vector<8x8x8xf32> -> vector<8x8x8xf32>
    "tpu.trace_stop"() : () -> ()
    "tpu.trace_start"() <{level = 10 : i32, message = "gse,ged->gsd"}> : () -> ()
    %cst_37 = arith.constant dense<0.000000e+00> : vector<8x8x32xf32>
    %64 = tpu.matmul %63, %43, %cst_37 {dimension_numbers = #tpu.dot_dimension_numbers<[2], [1], [1], [2], [0, 0, 0, 1, 1, 2], [0], [0]>} : vector<8x8x8xf32>, vector<8x8x32xf32>, vector<8x8x32xf32> -> vector<8x8x32xf32>
    "tpu.trace_stop"() : () -> ()
    %65 = vector.shape_cast %64 : vector<8x8x32xf32> to vector<2x4x8x32xf32>
    %cst_38 = arith.constant dense<0.000000e+00> : vector<2x8x32xf32>
    %66 = vector.multi_reduction <add>, %65, %cst_38 [1] : vector<2x4x8x32xf32> to vector<2x8x32xf32>
    %67 = vector.shape_cast %66 : vector<2x8x32xf32> to vector<16x32xf32>
    %68 = vector.broadcast %16 : vector<1x32xf32> to vector<16x32xf32>
    %69 = arith.addf %67, %68 : vector<16x32xf32>
    %70 = arith.addf %7, %69 : vector<16x32xf32>
    %cst_39 = arith.constant dense<0.000000e+00> : vector<16xf32>
    %71 = vector.multi_reduction <add>, %70, %cst_39 [1] : vector<16x32xf32> to vector<16xf32>
    %72 = vector.shape_cast %71 : vector<16xf32> to vector<16x1xf32>
    %cst_40 = arith.constant 3.200000e+01 : f32
    %73 = vector.broadcast %cst_40 : f32 to vector<16x1xf32>
    %74 = arith.divf %72, %73 : vector<16x1xf32>
    %75 = vector.broadcast %74 : vector<16x1xf32> to vector<16x32xf32>
    %76 = arith.subf %70, %75 : vector<16x32xf32>
    %77 = arith.mulf %76, %76 : vector<16x32xf32>
    %cst_41 = arith.constant dense<0.000000e+00> : vector<16xf32>
    %78 = vector.multi_reduction <add>, %77, %cst_41 [1] : vector<16x32xf32> to vector<16xf32>
    %79 = vector.shape_cast %78 : vector<16xf32> to vector<16x1xf32>
    %cst_42 = arith.constant 3.200000e+01 : f32
    %80 = vector.broadcast %cst_42 : f32 to vector<16x1xf32>
    %81 = arith.divf %79, %80 : vector<16x1xf32>
    %cst_43 = arith.constant 9.99999974E-6 : f32
    %82 = vector.broadcast %cst_43 : f32 to vector<16x1xf32>
    %83 = arith.addf %81, %82 : vector<16x1xf32>
    %84 = math.rsqrt %83 : vector<16x1xf32>
    %85 = vector.broadcast %84 : vector<16x1xf32> to vector<16x32xf32>
    %86 = arith.mulf %76, %85 : vector<16x32xf32>
    %87 = vector.broadcast %17 : vector<1x32xf32> to vector<16x32xf32>
    %88 = arith.mulf %86, %87 : vector<16x32xf32>
    %89 = vector.broadcast %18 : vector<1x32xf32> to vector<16x32xf32>
    %90 = arith.addf %88, %89 : vector<16x32xf32>
    %cst_44 = arith.constant dense<0.000000e+00> : vector<16x64xf32>
    %91 = tpu.matmul %90, %23, %cst_44 {dimension_numbers = #tpu.dot_dimension_numbers<[1], [0], [0], [1], [0, 0, 1, 1], [], []>} : vector<16x32xf32>, vector<32x64xf32>, vector<16x64xf32> -> vector<16x64xf32>
    %92 = vector.broadcast %25 : vector<1x64xf32> to vector<16x64xf32>
    %93 = arith.addf %91, %92 : vector<16x64xf32>
    %cst_45 = arith.constant 0.000000e+00 : f32
    %94 = vector.broadcast %cst_45 : f32 to vector<16x64xf32>
    %95 = arith.maximumf %93, %94 : vector<16x64xf32>
    %cst_46 = arith.constant dense<0.000000e+00> : vector<16x32xf32>
    %96 = tpu.matmul %95, %27, %cst_46 {dimension_numbers = #tpu.dot_dimension_numbers<[1], [0], [0], [1], [0, 0, 1, 1], [], []>} : vector<16x64xf32>, vector<64x32xf32>, vector<16x32xf32> -> vector<16x32xf32>
    %97 = vector.broadcast %19 : vector<1x32xf32> to vector<16x32xf32>
    %98 = arith.addf %96, %97 : vector<16x32xf32>
    %99 = arith.addf %90, %98 : vector<16x32xf32>
    %cst_47 = arith.constant dense<0.000000e+00> : vector<16xf32>
    %100 = vector.multi_reduction <add>, %99, %cst_47 [1] : vector<16x32xf32> to vector<16xf32>
    %101 = vector.shape_cast %100 : vector<16xf32> to vector<16x1xf32>
    %cst_48 = arith.constant 3.200000e+01 : f32
    %102 = vector.broadcast %cst_48 : f32 to vector<16x1xf32>
    %103 = arith.divf %101, %102 : vector<16x1xf32>
    %104 = vector.broadcast %103 : vector<16x1xf32> to vector<16x32xf32>
    %105 = arith.subf %99, %104 : vector<16x32xf32>
    %106 = arith.mulf %105, %105 : vector<16x32xf32>
    %cst_49 = arith.constant dense<0.000000e+00> : vector<16xf32>
    %107 = vector.multi_reduction <add>, %106, %cst_49 [1] : vector<16x32xf32> to vector<16xf32>
    %108 = vector.shape_cast %107 : vector<16xf32> to vector<16x1xf32>
    %cst_50 = arith.constant 3.200000e+01 : f32
    %109 = vector.broadcast %cst_50 : f32 to vector<16x1xf32>
    %110 = arith.divf %108, %109 : vector<16x1xf32>
    %cst_51 = arith.constant 9.99999974E-6 : f32
    %111 = vector.broadcast %cst_51 : f32 to vector<16x1xf32>
    %112 = arith.addf %110, %111 : vector<16x1xf32>
    %113 = math.rsqrt %112 : vector<16x1xf32>
    %114 = vector.broadcast %113 : vector<16x1xf32> to vector<16x32xf32>
    %115 = arith.mulf %105, %114 : vector<16x32xf32>
    %116 = vector.broadcast %20 : vector<1x32xf32> to vector<16x32xf32>
    %117 = arith.mulf %115, %116 : vector<16x32xf32>
    %118 = vector.broadcast %21 : vector<1x32xf32> to vector<16x32xf32>
    %119 = arith.addf %117, %118 : vector<16x32xf32>
    %c1 = arith.constant 1 : index
    %c0_52 = arith.constant 0 : index
    %c0_53 = arith.constant 0 : index
    %c0_54 = arith.constant 0 : index
    %120 = vector.load %arg4[%c1, %c0_52, %c0_53, %c0_54] : memref<2x4x32x24xf32, #tpu.memory_space<vmem>>, vector<1x4x32x24xf32>
    %121 = vector.shape_cast %120 : vector<1x4x32x24xf32> to vector<4x32x24xf32>
    %c1_55 = arith.constant 1 : index
    %c0_56 = arith.constant 0 : index
    %c0_57 = arith.constant 0 : index
    %c0_58 = arith.constant 0 : index
    %122 = vector.load %arg5[%c1_55, %c0_56, %c0_57, %c0_58] : memref<2x4x1x24xf32, #tpu.memory_space<vmem>>, vector<1x4x1x24xf32>
    %123 = vector.shape_cast %122 : vector<1x4x1x24xf32> to vector<4x1x24xf32>
    %c1_59 = arith.constant 1 : index
    %c0_60 = arith.constant 0 : index
    %c0_61 = arith.constant 0 : index
    %c0_62 = arith.constant 0 : index
    %124 = vector.load %arg6[%c1_59, %c0_60, %c0_61, %c0_62] : memref<2x4x8x32xf32, #tpu.memory_space<vmem>>, vector<1x4x8x32xf32>
    %125 = vector.shape_cast %124 : vector<1x4x8x32xf32> to vector<4x8x32xf32>
    %c1_63 = arith.constant 1 : index
    %c0_64 = arith.constant 0 : index
    %c0_65 = arith.constant 0 : index
    %126 = vector.load %arg7[%c1_63, %c0_64, %c0_65] : memref<2x6x32xf32, #tpu.memory_space<vmem>>, vector<1x6x32xf32>
    %127 = vector.shape_cast %126 : vector<1x6x32xf32> to vector<6x32xf32>
    %128 = vector.extract_strided_slice %127 {offsets = [0, 0], sizes = [1, 32], strides = [1, 1]} : vector<6x32xf32> to vector<1x32xf32>
    %129 = vector.extract_strided_slice %127 {offsets = [1, 0], sizes = [1, 32], strides = [1, 1]} : vector<6x32xf32> to vector<1x32xf32>
    %130 = vector.extract_strided_slice %127 {offsets = [2, 0], sizes = [1, 32], strides = [1, 1]} : vector<6x32xf32> to vector<1x32xf32>
    %131 = vector.extract_strided_slice %127 {offsets = [3, 0], sizes = [1, 32], strides = [1, 1]} : vector<6x32xf32> to vector<1x32xf32>
    %132 = vector.extract_strided_slice %127 {offsets = [4, 0], sizes = [1, 32], strides = [1, 1]} : vector<6x32xf32> to vector<1x32xf32>
    %133 = vector.extract_strided_slice %127 {offsets = [5, 0], sizes = [1, 32], strides = [1, 1]} : vector<6x32xf32> to vector<1x32xf32>
    %c1_66 = arith.constant 1 : index
    %c0_67 = arith.constant 0 : index
    %c0_68 = arith.constant 0 : index
    %134 = vector.load %arg8[%c1_66, %c0_67, %c0_68] : memref<2x32x64xf32, #tpu.memory_space<vmem>>, vector<1x32x64xf32>
    %135 = vector.shape_cast %134 : vector<1x32x64xf32> to vector<32x64xf32>
    %c1_69 = arith.constant 1 : index
    %c0_70 = arith.constant 0 : index
    %c0_71 = arith.constant 0 : index
    %136 = vector.load %arg9[%c1_69, %c0_70, %c0_71] : memref<2x1x64xf32, #tpu.memory_space<vmem>>, vector<1x1x64xf32>
    %137 = vector.shape_cast %136 : vector<1x1x64xf32> to vector<1x64xf32>
    %c1_72 = arith.constant 1 : index
    %c0_73 = arith.constant 0 : index
    %c0_74 = arith.constant 0 : index
    %138 = vector.load %arg10[%c1_72, %c0_73, %c0_74] : memref<2x64x32xf32, #tpu.memory_space<vmem>>, vector<1x64x32xf32>
    %139 = vector.shape_cast %138 : vector<1x64x32xf32> to vector<64x32xf32>
    %140 = vector.shape_cast %119 : vector<16x32xf32> to vector<2x1x8x32xf32>
    %141 = vector.shape_cast %140 : vector<2x1x8x32xf32> to vector<2x1x8x32xf32>
    %142 = vector.broadcast %141 : vector<2x1x8x32xf32> to vector<2x4x8x32xf32>
    %143 = vector.shape_cast %142 : vector<2x4x8x32xf32> to vector<8x8x32xf32>
    %144 = vector.shape_cast %121 : vector<4x32x24xf32> to vector<1x4x32x24xf32>
    %145 = vector.shape_cast %144 : vector<1x4x32x24xf32> to vector<1x4x32x24xf32>
    %146 = vector.broadcast %145 : vector<1x4x32x24xf32> to vector<2x4x32x24xf32>
    %147 = vector.shape_cast %146 : vector<2x4x32x24xf32> to vector<8x32x24xf32>
    %148 = vector.shape_cast %123 : vector<4x1x24xf32> to vector<1x4x1x24xf32>
    %149 = vector.shape_cast %148 : vector<1x4x1x24xf32> to vector<1x4x1x24xf32>
    %150 = vector.broadcast %149 : vector<1x4x1x24xf32> to vector<2x4x1x24xf32>
    %151 = vector.shape_cast %150 : vector<2x4x1x24xf32> to vector<8x1x24xf32>
    %152 = vector.shape_cast %125 : vector<4x8x32xf32> to vector<1x4x8x32xf32>
    %153 = vector.shape_cast %152 : vector<1x4x8x32xf32> to vector<1x4x8x32xf32>
    %154 = vector.broadcast %153 : vector<1x4x8x32xf32> to vector<2x4x8x32xf32>
    %155 = vector.shape_cast %154 : vector<2x4x8x32xf32> to vector<8x8x32xf32>
    "tpu.trace_start"() <{level = 10 : i32, message = "gsd,gde->gse"}> : () -> ()
    %cst_75 = arith.constant dense<0.000000e+00> : vector<8x8x24xf32>
    %156 = tpu.matmul %143, %147, %cst_75 {dimension_numbers = #tpu.dot_dimension_numbers<[2], [1], [1], [2], [0, 0, 0, 1, 1, 2], [0], [0]>} : vector<8x8x32xf32>, vector<8x32x24xf32>, vector<8x8x24xf32> -> vector<8x8x24xf32>
    "tpu.trace_stop"() : () -> ()
    %157 = vector.broadcast %151 : vector<8x1x24xf32> to vector<8x8x24xf32>
    %158 = arith.addf %156, %157 : vector<8x8x24xf32>
    %159 = vector.extract_strided_slice %158 {offsets = [0, 0, 0], sizes = [8, 8, 8], strides = [1, 1, 1]} : vector<8x8x24xf32> to vector<8x8x8xf32>
    %160 = vector.extract_strided_slice %158 {offsets = [0, 0, 8], sizes = [8, 8, 8], strides = [1, 1, 1]} : vector<8x8x24xf32> to vector<8x8x8xf32>
    %161 = vector.extract_strided_slice %158 {offsets = [0, 0, 16], sizes = [8, 8, 8], strides = [1, 1, 1]} : vector<8x8x24xf32> to vector<8x8x8xf32>
    "tpu.trace_start"() <{level = 10 : i32, message = "gqe,gke->gqk"}> : () -> ()
    %cst_76 = arith.constant dense<0.000000e+00> : vector<8x8x8xf32>
    %162 = tpu.matmul %159, %160, %cst_76 {dimension_numbers = #tpu.dot_dimension_numbers<[2], [2], [1], [1], [0, 0, 0, 1, 1, 1], [0], [0]>} : vector<8x8x8xf32>, vector<8x8x8xf32>, vector<8x8x8xf32> -> vector<8x8x8xf32>
    "tpu.trace_stop"() : () -> ()
    %cst_77 = arith.constant 0.353553385 : f32
    %163 = vector.broadcast %cst_77 : f32 to vector<8x8x8xf32>
    %164 = arith.mulf %162, %163 : vector<8x8x8xf32>
    %cst_78 = arith.constant dense<0xFF800000> : vector<8x8xf32>
    %165 = vector.multi_reduction <maximumf>, %164, %cst_78 [2] : vector<8x8x8xf32> to vector<8x8xf32>
    %166 = vector.shape_cast %165 : vector<8x8xf32> to vector<8x8x1xf32>
    %167 = vector.broadcast %166 : vector<8x8x1xf32> to vector<8x8x8xf32>
    %168 = arith.subf %164, %167 : vector<8x8x8xf32>
    %169 = math.exp %168 : vector<8x8x8xf32>
    %cst_79 = arith.constant dense<0.000000e+00> : vector<8x8xf32>
    %170 = vector.multi_reduction <add>, %169, %cst_79 [2] : vector<8x8x8xf32> to vector<8x8xf32>
    %171 = vector.shape_cast %170 : vector<8x8xf32> to vector<8x8x1xf32>
    %172 = tpu.reciprocal %171 {approx = true} : vector<8x8x1xf32> -> vector<8x8x1xf32>
    %173 = vector.broadcast %172 : vector<8x8x1xf32> to vector<8x8x8xf32>
    %174 = arith.mulf %169, %173 : vector<8x8x8xf32>
    "tpu.trace_start"() <{level = 10 : i32, message = "gqk,gke->gqe"}> : () -> ()
    %cst_80 = arith.constant dense<0.000000e+00> : vector<8x8x8xf32>
    %175 = tpu.matmul %174, %161, %cst_80 {dimension_numbers = #tpu.dot_dimension_numbers<[2], [1], [1], [2], [0, 0, 0, 1, 1, 2], [0], [0]>} : vector<8x8x8xf32>, vector<8x8x8xf32>, vector<8x8x8xf32> -> vector<8x8x8xf32>
    "tpu.trace_stop"() : () -> ()
    "tpu.trace_start"() <{level = 10 : i32, message = "gse,ged->gsd"}> : () -> ()
    %cst_81 = arith.constant dense<0.000000e+00> : vector<8x8x32xf32>
    %176 = tpu.matmul %175, %155, %cst_81 {dimension_numbers = #tpu.dot_dimension_numbers<[2], [1], [1], [2], [0, 0, 0, 1, 1, 2], [0], [0]>} : vector<8x8x8xf32>, vector<8x8x32xf32>, vector<8x8x32xf32> -> vector<8x8x32xf32>
    "tpu.trace_stop"() : () -> ()
    %177 = vector.shape_cast %176 : vector<8x8x32xf32> to vector<2x4x8x32xf32>
    %cst_82 = arith.constant dense<0.000000e+00> : vector<2x8x32xf32>
    %178 = vector.multi_reduction <add>, %177, %cst_82 [1] : vector<2x4x8x32xf32> to vector<2x8x32xf32>
    %179 = vector.shape_cast %178 : vector<2x8x32xf32> to vector<16x32xf32>
    %180 = vector.broadcast %128 : vector<1x32xf32> to vector<16x32xf32>
    %181 = arith.addf %179, %180 : vector<16x32xf32>
    %182 = arith.addf %119, %181 : vector<16x32xf32>
    %cst_83 = arith.constant dense<0.000000e+00> : vector<16xf32>
    %183 = vector.multi_reduction <add>, %182, %cst_83 [1] : vector<16x32xf32> to vector<16xf32>
    %184 = vector.shape_cast %183 : vector<16xf32> to vector<16x1xf32>
    %cst_84 = arith.constant 3.200000e+01 : f32
    %185 = vector.broadcast %cst_84 : f32 to vector<16x1xf32>
    %186 = arith.divf %184, %185 : vector<16x1xf32>
    %187 = vector.broadcast %186 : vector<16x1xf32> to vector<16x32xf32>
    %188 = arith.subf %182, %187 : vector<16x32xf32>
    %189 = arith.mulf %188, %188 : vector<16x32xf32>
    %cst_85 = arith.constant dense<0.000000e+00> : vector<16xf32>
    %190 = vector.multi_reduction <add>, %189, %cst_85 [1] : vector<16x32xf32> to vector<16xf32>
    %191 = vector.shape_cast %190 : vector<16xf32> to vector<16x1xf32>
    %cst_86 = arith.constant 3.200000e+01 : f32
    %192 = vector.broadcast %cst_86 : f32 to vector<16x1xf32>
    %193 = arith.divf %191, %192 : vector<16x1xf32>
    %cst_87 = arith.constant 9.99999974E-6 : f32
    %194 = vector.broadcast %cst_87 : f32 to vector<16x1xf32>
    %195 = arith.addf %193, %194 : vector<16x1xf32>
    %196 = math.rsqrt %195 : vector<16x1xf32>
    %197 = vector.broadcast %196 : vector<16x1xf32> to vector<16x32xf32>
    %198 = arith.mulf %188, %197 : vector<16x32xf32>
    %199 = vector.broadcast %129 : vector<1x32xf32> to vector<16x32xf32>
    %200 = arith.mulf %198, %199 : vector<16x32xf32>
    %201 = vector.broadcast %130 : vector<1x32xf32> to vector<16x32xf32>
    %202 = arith.addf %200, %201 : vector<16x32xf32>
    %cst_88 = arith.constant dense<0.000000e+00> : vector<16x64xf32>
    %203 = tpu.matmul %202, %135, %cst_88 {dimension_numbers = #tpu.dot_dimension_numbers<[1], [0], [0], [1], [0, 0, 1, 1], [], []>} : vector<16x32xf32>, vector<32x64xf32>, vector<16x64xf32> -> vector<16x64xf32>
    %204 = vector.broadcast %137 : vector<1x64xf32> to vector<16x64xf32>
    %205 = arith.addf %203, %204 : vector<16x64xf32>
    %cst_89 = arith.constant 0.000000e+00 : f32
    %206 = vector.broadcast %cst_89 : f32 to vector<16x64xf32>
    %207 = arith.maximumf %205, %206 : vector<16x64xf32>
    %cst_90 = arith.constant dense<0.000000e+00> : vector<16x32xf32>
    %208 = tpu.matmul %207, %139, %cst_90 {dimension_numbers = #tpu.dot_dimension_numbers<[1], [0], [0], [1], [0, 0, 1, 1], [], []>} : vector<16x64xf32>, vector<64x32xf32>, vector<16x32xf32> -> vector<16x32xf32>
    %209 = vector.broadcast %131 : vector<1x32xf32> to vector<16x32xf32>
    %210 = arith.addf %208, %209 : vector<16x32xf32>
    %211 = arith.addf %202, %210 : vector<16x32xf32>
    %cst_91 = arith.constant dense<0.000000e+00> : vector<16xf32>
    %212 = vector.multi_reduction <add>, %211, %cst_91 [1] : vector<16x32xf32> to vector<16xf32>
    %213 = vector.shape_cast %212 : vector<16xf32> to vector<16x1xf32>
    %cst_92 = arith.constant 3.200000e+01 : f32
    %214 = vector.broadcast %cst_92 : f32 to vector<16x1xf32>
    %215 = arith.divf %213, %214 : vector<16x1xf32>
    %216 = vector.broadcast %215 : vector<16x1xf32> to vector<16x32xf32>
    %217 = arith.subf %211, %216 : vector<16x32xf32>
    %218 = arith.mulf %217, %217 : vector<16x32xf32>
    %cst_93 = arith.constant dense<0.000000e+00> : vector<16xf32>
    %219 = vector.multi_reduction <add>, %218, %cst_93 [1] : vector<16x32xf32> to vector<16xf32>
    %220 = vector.shape_cast %219 : vector<16xf32> to vector<16x1xf32>
    %cst_94 = arith.constant 3.200000e+01 : f32
    %221 = vector.broadcast %cst_94 : f32 to vector<16x1xf32>
    %222 = arith.divf %220, %221 : vector<16x1xf32>
    %cst_95 = arith.constant 9.99999974E-6 : f32
    %223 = vector.broadcast %cst_95 : f32 to vector<16x1xf32>
    %224 = arith.addf %222, %223 : vector<16x1xf32>
    %225 = math.rsqrt %224 : vector<16x1xf32>
    %226 = vector.broadcast %225 : vector<16x1xf32> to vector<16x32xf32>
    %227 = arith.mulf %217, %226 : vector<16x32xf32>
    %228 = vector.broadcast %132 : vector<1x32xf32> to vector<16x32xf32>
    %229 = arith.mulf %227, %228 : vector<16x32xf32>
    %230 = vector.broadcast %133 : vector<1x32xf32> to vector<16x32xf32>
    %231 = arith.addf %229, %230 : vector<16x32xf32>
    %c0_96 = arith.constant 0 : index
    %c0_97 = arith.constant 0 : index
    %232 = vector.load %arg11[%c0_96, %c0_97] : memref<1x32xf32, #tpu.memory_space<vmem>>, vector<1x32xf32>
    %c0_98 = arith.constant 0 : index
    %c0_99 = arith.constant 0 : index
    %233 = vector.load %arg12[%c0_98, %c0_99] : memref<1x32xf32, #tpu.memory_space<vmem>>, vector<1x32xf32>
    %cst_100 = arith.constant dense<0.000000e+00> : vector<16xf32>
    %234 = vector.multi_reduction <add>, %231, %cst_100 [1] : vector<16x32xf32> to vector<16xf32>
    %235 = vector.shape_cast %234 : vector<16xf32> to vector<16x1xf32>
    %cst_101 = arith.constant 3.200000e+01 : f32
    %236 = vector.broadcast %cst_101 : f32 to vector<16x1xf32>
    %237 = arith.divf %235, %236 : vector<16x1xf32>
    %238 = vector.broadcast %237 : vector<16x1xf32> to vector<16x32xf32>
    %239 = arith.subf %231, %238 : vector<16x32xf32>
    %240 = arith.mulf %239, %239 : vector<16x32xf32>
    %cst_102 = arith.constant dense<0.000000e+00> : vector<16xf32>
    %241 = vector.multi_reduction <add>, %240, %cst_102 [1] : vector<16x32xf32> to vector<16xf32>
    %242 = vector.shape_cast %241 : vector<16xf32> to vector<16x1xf32>
    %cst_103 = arith.constant 3.200000e+01 : f32
    %243 = vector.broadcast %cst_103 : f32 to vector<16x1xf32>
    %244 = arith.divf %242, %243 : vector<16x1xf32>
    %cst_104 = arith.constant 9.99999974E-6 : f32
    %245 = vector.broadcast %cst_104 : f32 to vector<16x1xf32>
    %246 = arith.addf %244, %245 : vector<16x1xf32>
    %247 = math.rsqrt %246 : vector<16x1xf32>
    %248 = vector.broadcast %247 : vector<16x1xf32> to vector<16x32xf32>
    %249 = arith.mulf %239, %248 : vector<16x32xf32>
    %250 = vector.broadcast %232 : vector<1x32xf32> to vector<16x32xf32>
    %251 = arith.mulf %249, %250 : vector<16x32xf32>
    %252 = vector.broadcast %233 : vector<1x32xf32> to vector<16x32xf32>
    %253 = arith.addf %251, %252 : vector<16x32xf32>
    %254 = vector.shape_cast %253 : vector<16x32xf32> to vector<2x8x32xf32>
    %cst_105 = arith.constant 0.000000e+00 : f32
    %255 = vector.broadcast %cst_105 : f32 to vector<2x4xf32>
    %256 = vector.extract_strided_slice %254 {offsets = [0, 0, 0], sizes = [2, 1, 32], strides = [1, 1, 1]} : vector<2x8x32xf32> to vector<2x1x32xf32>
    %257 = vector.shape_cast %256 : vector<2x1x32xf32> to vector<2x32xf32>
    %c0_106 = arith.constant 0 : index
    %c0_107 = arith.constant 0 : index
    %c0_108 = arith.constant 0 : index
    %258 = vector.load %arg13[%c0_106, %c0_107, %c0_108] : memref<8x32x4xf32, #tpu.memory_space<vmem>>, vector<1x32x4xf32>
    %259 = vector.shape_cast %258 : vector<1x32x4xf32> to vector<32x4xf32>
    %cst_109 = arith.constant dense<0.000000e+00> : vector<2x4xf32>
    %260 = tpu.matmul %257, %259, %cst_109 {dimension_numbers = #tpu.dot_dimension_numbers<[1], [0], [0], [1], [0, 0, 1, 1], [], []>} : vector<2x32xf32>, vector<32x4xf32>, vector<2x4xf32> -> vector<2x4xf32>
    %261 = arith.addf %255, %260 : vector<2x4xf32>
    %262 = vector.extract_strided_slice %254 {offsets = [0, 1, 0], sizes = [2, 1, 32], strides = [1, 1, 1]} : vector<2x8x32xf32> to vector<2x1x32xf32>
    %263 = vector.shape_cast %262 : vector<2x1x32xf32> to vector<2x32xf32>
    %c1_110 = arith.constant 1 : index
    %c0_111 = arith.constant 0 : index
    %c0_112 = arith.constant 0 : index
    %264 = vector.load %arg13[%c1_110, %c0_111, %c0_112] : memref<8x32x4xf32, #tpu.memory_space<vmem>>, vector<1x32x4xf32>
    %265 = vector.shape_cast %264 : vector<1x32x4xf32> to vector<32x4xf32>
    %cst_113 = arith.constant dense<0.000000e+00> : vector<2x4xf32>
    %266 = tpu.matmul %263, %265, %cst_113 {dimension_numbers = #tpu.dot_dimension_numbers<[1], [0], [0], [1], [0, 0, 1, 1], [], []>} : vector<2x32xf32>, vector<32x4xf32>, vector<2x4xf32> -> vector<2x4xf32>
    %267 = arith.addf %261, %266 : vector<2x4xf32>
    %268 = vector.extract_strided_slice %254 {offsets = [0, 2, 0], sizes = [2, 1, 32], strides = [1, 1, 1]} : vector<2x8x32xf32> to vector<2x1x32xf32>
    %269 = vector.shape_cast %268 : vector<2x1x32xf32> to vector<2x32xf32>
    %c2 = arith.constant 2 : index
    %c0_114 = arith.constant 0 : index
    %c0_115 = arith.constant 0 : index
    %270 = vector.load %arg13[%c2, %c0_114, %c0_115] : memref<8x32x4xf32, #tpu.memory_space<vmem>>, vector<1x32x4xf32>
    %271 = vector.shape_cast %270 : vector<1x32x4xf32> to vector<32x4xf32>
    %cst_116 = arith.constant dense<0.000000e+00> : vector<2x4xf32>
    %272 = tpu.matmul %269, %271, %cst_116 {dimension_numbers = #tpu.dot_dimension_numbers<[1], [0], [0], [1], [0, 0, 1, 1], [], []>} : vector<2x32xf32>, vector<32x4xf32>, vector<2x4xf32> -> vector<2x4xf32>
    %273 = arith.addf %267, %272 : vector<2x4xf32>
    %274 = vector.extract_strided_slice %254 {offsets = [0, 3, 0], sizes = [2, 1, 32], strides = [1, 1, 1]} : vector<2x8x32xf32> to vector<2x1x32xf32>
    %275 = vector.shape_cast %274 : vector<2x1x32xf32> to vector<2x32xf32>
    %c3 = arith.constant 3 : index
    %c0_117 = arith.constant 0 : index
    %c0_118 = arith.constant 0 : index
    %276 = vector.load %arg13[%c3, %c0_117, %c0_118] : memref<8x32x4xf32, #tpu.memory_space<vmem>>, vector<1x32x4xf32>
    %277 = vector.shape_cast %276 : vector<1x32x4xf32> to vector<32x4xf32>
    %cst_119 = arith.constant dense<0.000000e+00> : vector<2x4xf32>
    %278 = tpu.matmul %275, %277, %cst_119 {dimension_numbers = #tpu.dot_dimension_numbers<[1], [0], [0], [1], [0, 0, 1, 1], [], []>} : vector<2x32xf32>, vector<32x4xf32>, vector<2x4xf32> -> vector<2x4xf32>
    %279 = arith.addf %273, %278 : vector<2x4xf32>
    %280 = vector.extract_strided_slice %254 {offsets = [0, 4, 0], sizes = [2, 1, 32], strides = [1, 1, 1]} : vector<2x8x32xf32> to vector<2x1x32xf32>
    %281 = vector.shape_cast %280 : vector<2x1x32xf32> to vector<2x32xf32>
    %c4 = arith.constant 4 : index
    %c0_120 = arith.constant 0 : index
    %c0_121 = arith.constant 0 : index
    %282 = vector.load %arg13[%c4, %c0_120, %c0_121] : memref<8x32x4xf32, #tpu.memory_space<vmem>>, vector<1x32x4xf32>
    %283 = vector.shape_cast %282 : vector<1x32x4xf32> to vector<32x4xf32>
    %cst_122 = arith.constant dense<0.000000e+00> : vector<2x4xf32>
    %284 = tpu.matmul %281, %283, %cst_122 {dimension_numbers = #tpu.dot_dimension_numbers<[1], [0], [0], [1], [0, 0, 1, 1], [], []>} : vector<2x32xf32>, vector<32x4xf32>, vector<2x4xf32> -> vector<2x4xf32>
    %285 = arith.addf %279, %284 : vector<2x4xf32>
    %286 = vector.extract_strided_slice %254 {offsets = [0, 5, 0], sizes = [2, 1, 32], strides = [1, 1, 1]} : vector<2x8x32xf32> to vector<2x1x32xf32>
    %287 = vector.shape_cast %286 : vector<2x1x32xf32> to vector<2x32xf32>
    %c5 = arith.constant 5 : index
    %c0_123 = arith.constant 0 : index
    %c0_124 = arith.constant 0 : index
    %288 = vector.load %arg13[%c5, %c0_123, %c0_124] : memref<8x32x4xf32, #tpu.memory_space<vmem>>, vector<1x32x4xf32>
    %289 = vector.shape_cast %288 : vector<1x32x4xf32> to vector<32x4xf32>
    %cst_125 = arith.constant dense<0.000000e+00> : vector<2x4xf32>
    %290 = tpu.matmul %287, %289, %cst_125 {dimension_numbers = #tpu.dot_dimension_numbers<[1], [0], [0], [1], [0, 0, 1, 1], [], []>} : vector<2x32xf32>, vector<32x4xf32>, vector<2x4xf32> -> vector<2x4xf32>
    %291 = arith.addf %285, %290 : vector<2x4xf32>
    %292 = vector.extract_strided_slice %254 {offsets = [0, 6, 0], sizes = [2, 1, 32], strides = [1, 1, 1]} : vector<2x8x32xf32> to vector<2x1x32xf32>
    %293 = vector.shape_cast %292 : vector<2x1x32xf32> to vector<2x32xf32>
    %c6 = arith.constant 6 : index
    %c0_126 = arith.constant 0 : index
    %c0_127 = arith.constant 0 : index
    %294 = vector.load %arg13[%c6, %c0_126, %c0_127] : memref<8x32x4xf32, #tpu.memory_space<vmem>>, vector<1x32x4xf32>
    %295 = vector.shape_cast %294 : vector<1x32x4xf32> to vector<32x4xf32>
    %cst_128 = arith.constant dense<0.000000e+00> : vector<2x4xf32>
    %296 = tpu.matmul %293, %295, %cst_128 {dimension_numbers = #tpu.dot_dimension_numbers<[1], [0], [0], [1], [0, 0, 1, 1], [], []>} : vector<2x32xf32>, vector<32x4xf32>, vector<2x4xf32> -> vector<2x4xf32>
    %297 = arith.addf %291, %296 : vector<2x4xf32>
    %298 = vector.extract_strided_slice %254 {offsets = [0, 7, 0], sizes = [2, 1, 32], strides = [1, 1, 1]} : vector<2x8x32xf32> to vector<2x1x32xf32>
    %299 = vector.shape_cast %298 : vector<2x1x32xf32> to vector<2x32xf32>
    %c7 = arith.constant 7 : index
    %c0_129 = arith.constant 0 : index
    %c0_130 = arith.constant 0 : index
    %300 = vector.load %arg13[%c7, %c0_129, %c0_130] : memref<8x32x4xf32, #tpu.memory_space<vmem>>, vector<1x32x4xf32>
    %301 = vector.shape_cast %300 : vector<1x32x4xf32> to vector<32x4xf32>
    %cst_131 = arith.constant dense<0.000000e+00> : vector<2x4xf32>
    %302 = tpu.matmul %299, %301, %cst_131 {dimension_numbers = #tpu.dot_dimension_numbers<[1], [0], [0], [1], [0, 0, 1, 1], [], []>} : vector<2x32xf32>, vector<32x4xf32>, vector<2x4xf32> -> vector<2x4xf32>
    %303 = arith.addf %297, %302 : vector<2x4xf32>
    %c0_132 = arith.constant 0 : index
    %c0_133 = arith.constant 0 : index
    %304 = vector.load %arg14[%c0_132, %c0_133] : memref<1x4xf32, #tpu.memory_space<vmem>>, vector<1x4xf32>
    %305 = vector.broadcast %304 : vector<1x4xf32> to vector<2x4xf32>
    %306 = arith.addf %303, %305 : vector<2x4xf32>
    %c0_134 = arith.constant 0 : index
    %c0_135 = arith.constant 0 : index
    %307 = vector.load %arg15[%c0_134, %c0_135] : memref<2x4xf32, #tpu.memory_space<vmem>>, vector<2x4xf32>
    tpu.vector_store %arg15[%c0_134, %c0_135], %306 {strides = array<i32>} : memref<2x4xf32, #tpu.memory_space<vmem>>, vector<2x4xf32>,
    return
  }
}

</mosaic_0001>

<bundles_post_ra>
// kernel: tpu_custom_call.1
= control target key start
LH: loop header
LB: loop body
LE: loop exit
PB: predicated region body
PF: predicated region fallthrough
CT: control target
= control target key end

     0   :  { %vm62_vm0 = vcmask 130048   ;;  %v7597_v5 = vmov 0.0   ;;  %s8759_s0 = inlined_call_operand.vmem [shape: f32[16,16], index: 0, kind: input, shape index: {}]   ;;  %s8760_s1 = inlined_call_operand.vmem [shape: f32[16,32], index: 1, kind: input, shape index: {}]   ;;  %s8761_s2 = inlined_call_operand.vmem [shape: f32[16,32], index: 2, kind: input, shape index: {}]   ;;  %s8762_s3 = inlined_call_operand.vmem [shape: f32[1,32], index: 3, kind: input, shape index: {}]   ;;  %s8763_s4 = inlined_call_operand.vmem [shape: f32[2,4,32,24], index: 4, kind: input, shape index: {}]   ;;  %s8764_s5 = inlined_call_operand.vmem [shape: f32[2,4,1,24], index: 5, kind: input, shape index: {}]   ;;  %s8765_s6 = inlined_call_operand.vmem [shape: f32[2,4,8,32], index: 6, kind: input, shape index: {}]   ;;  %s8766_s7 = inlined_call_operand.vmem [shape: f32[2,6,32], index: 7, kind: input, shape index: {}]   ;;  %s8767_s8 = inlined_call_operand.vmem [shape: f32[2,32,64], index: 8, kind: input, shape index: {}]   ;;  %s8768_s9 = inlined_call_operand.vmem [shape: f32[2,1,64], index: 9, kind: input, shape index: {}]   ;;  %s8769_s10 = inlined_call_operand.vmem [shape: f32[2,64,32], index: 10, kind: input, shape index: {}]   ;;  %s8770_s11 = inlined_call_operand.vmem [shape: f32[1,32], index: 11, kind: input, shape index: {}]   ;;  %s8771_s12 = inlined_call_operand.vmem [shape: f32[1,32], index: 12, kind: input, shape index: {}]   ;;  %s8772_s13 = inlined_call_operand.vmem [shape: f32[8,32,4], index: 13, kind: input, shape index: {}]   ;;  %s8773_s14 = inlined_call_operand.vmem [shape: f32[1,4], index: 14, kind: input, shape index: {}]   ;;  %s8774_s15 = inlined_call_operand.hbm [shape: f32[2,4], index: 15, kind: output, shape index: {}]  }
   0x1   :  { %v54_v0 = vld [vmem:[%s8761_s2 + $0x8] sm:$0xff]  ;;  %v53_v1 = vld [vmem:[%s8761_s2] sm:$0xff]  ;;  %v7694_v3 = vld [vmem:[%s8763_s4 + $0x18] sm:$0xff]  ;;  %6922 = vmatprep.subr.mxu1 %v7597_v5 }
   0x2   :  { %v51_v2 = vld [vmem:[%s8759_s0] sm:$0xff]  ;;  %6915 = vmatprep.subr.mxu0 %v54_v0  ;;  %v52_v4 = vld [vmem:[%s8759_s0 + $0x8] sm:$0xff] }
   0x3   :  { %6919 = vmatprep.mubr.msk.f32.mxu0 %vm62_vm0, %v51_v2  ;;  %6916 = vmatpush3.msra.mxu0 %v54_v0 }
   0x4   :  { %20 = vsyncpa [#allocation3], 0  ;;  %6917 = vmatprep.subr.mxu0 %v53_v1  ;;  %6923 = vmatpush3.msra.mxu1 %v7694_v3  ;;  %v7704_v6 = vld [vmem:[%s8763_s4 + $0x38] sm:$0xff]  ;;  %v7713_v7 = vld [vmem:[%s8763_s4 + $0x10] sm:$0xff]  ;;  %vm7598_vm1 = vmmov 0   ;;  %vm210_vm2 = vcmask 261120  }
   0x5   :  { %6918 = vmatpush3.msra.mxu0 %v53_v1  ;;  %6924 = vmatprep.subr.mxu1 %v7597_v5  ;;  %v154_v8 = vld [vmem:[%s8763_s4 + $0x30] sm:$0xff]  ;;  %v149_v9 = vld [vmem:[%s8763_s4 + $0x8] sm:$0xff]  ;;  %v148_v11 = vld [vmem:[%s8763_s4] sm:$0xff]  ;;  %s7599_s30 = smov 120   ;;  %vm780_vm3 = vcmask 64512   ;;  %s7600_s19 = smov 112  }
   0x6   :  { %6920 = vmatmul.mubr.msk.f32.vlgmr.msra.gmra.mxu0 %vm62_vm0, %v52_v4  ;;  %6933 = vmatprep.subr.mxu0 %v7597_v5  ;;  %v153_v10 = vld [vmem:[%s8763_s4 + $0x28] sm:$0xff]  ;;  %v152_v12 = vld [vmem:[%s8763_s4 + $0x20] sm:$0xff]  ;;  %v159_v19 = vld [vmem:[%s8763_s4 + $0x58] sm:$0xff]  ;;  %vm2836_vm4 = vcmask 523264   ;;  %vm5827_vm5 = vcmask 1041409   ;;  %vm6469_vm6 = vcmask 25600  }
   0x7   :  { %6934 = vmatpush3.msra.mxu0 %v7704_v6  ;;  %6925 = vmatpush3.msra.mxu1 %v7713_v7  ;;  %v6485_v14 = vld [vmem:[%s8762_s3] ss:$0 sm:$0xff]  ;;  %v163_v20 = vld [vmem:[%s8763_s4 + $0x78] sm:$0xff]  ;;  %v158_v21 = vld [vmem:[%s8763_s4 + $0x50] sm:$0xff] }
   0x8   :  { %6935 = vmatprep.subr.mxu0 %v7597_v5  ;;  %6926 = vmatprep.subr.mxu1 %v7597_v5  ;;  %v144_v16 = vld [vmem:[%s8760_s1] sm:$0xff]  ;;  %v162_v22 = vld [vmem:[%s8763_s4 + $0x70] sm:$0xff]  ;;  %v157_v23 = vld [vmem:[%s8763_s4 + $0x48] sm:$0xff] }
   0x9   :  { %6936 = vmatpush3.msra.mxu0 %v154_v8  ;;  %6927 = vmatpush3.msra.mxu1 %v149_v9  ;;  %v161_v24 = vld [vmem:[%s8763_s4 + $0x68] sm:$0xff]  ;;  %v156_v25 = vld [vmem:[%s8763_s4 + $0x40] sm:$0xff] }
   0xa   :  { %6937 = vmatprep.subr.mxu0 %v7597_v5  ;;  %6928 = vmatprep.subr.mxu1 %v7597_v5  ;;  %v160_v26 = vld [vmem:[%s8763_s4 + $0x60] sm:$0xff]  ;;  %v145_v28 = vld [vmem:[%s8760_s1 + $0x8] sm:$0xff] }
   0xb   :  { %6938 = vmatpush3.msra.mxu0 %v153_v10  ;;  %6929 = vmatpush3.msra.mxu1 %v148_v11  ;;  %v6488_v30 = vld [vmem:[%s8764_s5] ss:$0 sm:$0xff]  ;;  %v6489_v34 = vld [vmem:[%s8764_s5 + $0x1] ss:$0 sm:$0xff]  ;;  %v6490_v38 = vld [vmem:[%s8764_s5 + $0x2] ss:$0 sm:$0xff] }
   0xc   :  { %6939 = vmatprep.subr.mxu0 %v7597_v5  ;;  %6930 = vmatprep.mubr.msk.f32.mxu1 %vm7598_vm1, %v7597_v5  ;;  %v6491_v42 = vld [vmem:[%s8764_s5 + $0x3] ss:$0 sm:$0xff] }
   0xd   :  { %6940 = vmatpush3.msra.mxu0 %v152_v12  ;;  %6941 = vmatprep.mubr.msk.f32.mxu0 %vm7598_vm1, %v7597_v5 }
   0xe   :  { %6944 = vmatprep.subr.mxu1 %v7597_v5  ;;  %6955 = vmatprep.subr.mxu0 %v7597_v5 }
  0xc6   :  { %v6921_v13 = vpop.f32.mrf.mxu0 }
  0xc7   :  { %v141_v27 = vadd.f32 %v6921_v13, %v6485_v14 }
  0xc8   :  { %v135_v15 = vpop.f32.mrf.mxu0 }
  0xc9   :  { %v136_v17 = vadd.f32 %v6485_v14, %v135_v15  ;;  %v7805_v29 = vadd.f32 %v145_v28, %v141_v27 }
  0xcb   :  { %v7747_v18 = vadd.f32 %v144_v16, %v136_v17 }
  0xcd   :  { %6931 = vmatmul.mubr.msk.f32.vlgmr.msra.gmra.mxu1 %vm210_vm2, %v7747_v18  ;;  %6942 = vmatmul.mubr.msk.f32.vlgmr.msra.gmra.mxu0 %vm210_vm2, %v7747_v18 }
  0xce   :  { %6945 = vmatpush3.msra.mxu1 %v159_v19  ;;  %6956 = vmatpush3.msra.mxu0 %v163_v20 }
  0xcf   :  { %6946 = vmatprep.subr.mxu1 %v7597_v5  ;;  %6957 = vmatprep.subr.mxu0 %v7597_v5 }
  0xd0   :  { %6947 = vmatpush3.msra.mxu1 %v158_v21  ;;  %6958 = vmatpush3.msra.mxu0 %v162_v22 }
  0xd1   :  { %6948 = vmatprep.subr.mxu1 %v7597_v5  ;;  %6959 = vmatprep.subr.mxu0 %v7597_v5 }
  0xd2   :  { %6949 = vmatpush3.msra.mxu1 %v157_v23  ;;  %6960 = vmatpush3.msra.mxu0 %v161_v24 }
  0xd3   :  { %6950 = vmatprep.subr.mxu1 %v7597_v5  ;;  %6961 = vmatprep.subr.mxu0 %v7597_v5 }
  0xd4   :  { %6951 = vmatpush3.msra.mxu1 %v156_v25  ;;  %6952 = vmatprep.mubr.msk.f32.mxu1 %vm7598_vm1, %v7597_v5 }
  0xd5   :  { %6962 = vmatpush3.msra.mxu0 %v160_v26  ;;  %6963 = vmatprep.mubr.msk.f32.mxu0 %vm7598_vm1, %v7597_v5 }
  0xd6   :  { %6953 = vmatmul.mubr.msk.f32.vlgmr.msra.gmra.mxu1 %vm210_vm2, %v7747_v18  ;;  %6964 = vmatmul.mubr.msk.f32.vlgmr.msra.gmra.mxu0 %vm210_vm2, %v7747_v18 }
  0xd7   :  { %6966 = vmatprep.subr.mxu1 %v7597_v5  ;;  %6977 = vmatprep.subr.mxu0 %v7597_v5 }
  0xd8   :  { %6967 = vmatpush3.msra.mxu1 %v7694_v3  ;;  %6978 = vmatpush3.msra.mxu0 %v7704_v6 }
  0xd9   :  { %6968 = vmatprep.subr.mxu1 %v7597_v5  ;;  %6979 = vmatprep.subr.mxu0 %v7597_v5 }
  0xda   :  { %6969 = vmatpush3.msra.mxu1 %v7713_v7  ;;  %6980 = vmatpush3.msra.mxu0 %v154_v8 }
  0xdb   :  { %6970 = vmatprep.subr.mxu1 %v7597_v5  ;;  %6981 = vmatprep.subr.mxu0 %v7597_v5 }
  0xdc   :  { %6971 = vmatpush3.msra.mxu1 %v149_v9  ;;  %6982 = vmatpush3.msra.mxu0 %v153_v10 }
  0xdd   :  { %6972 = vmatprep.subr.mxu1 %v7597_v5  ;;  %6983 = vmatprep.subr.mxu0 %v7597_v5 }
  0xde   :  { %6973 = vmatpush3.msra.mxu1 %v148_v11  ;;  %6974 = vmatprep.mubr.msk.f32.mxu1 %vm7598_vm1, %v7597_v5 }
  0xdf   :  { %6984 = vmatpush3.msra.mxu0 %v152_v12  ;;  %6985 = vmatprep.mubr.msk.f32.mxu0 %vm7598_vm1, %v7597_v5 }
  0xe0   :  { %6975 = vmatmul.mubr.msk.f32.vlgmr.msra.gmra.mxu1 %vm210_vm2, %v7805_v29  ;;  %6986 = vmatmul.mubr.msk.f32.vlgmr.msra.gmra.mxu0 %vm210_vm2, %v7805_v29 }
  0xe1   :  { %6988 = vmatprep.subr.mxu1 %v7597_v5  ;;  %6999 = vmatprep.subr.mxu0 %v7597_v5 }
  0xe2   :  { %6989 = vmatpush3.msra.mxu1 %v159_v19  ;;  %7000 = vmatpush3.msra.mxu0 %v163_v20 }
  0xe3   :  { %6990 = vmatprep.subr.mxu1 %v7597_v5  ;;  %7001 = vmatprep.subr.mxu0 %v7597_v5 }
  0xe4   :  { %6991 = vmatpush3.msra.mxu1 %v158_v21  ;;  %7002 = vmatpush3.msra.mxu0 %v162_v22 }
  0xe5   :  { %6992 = vmatprep.subr.mxu1 %v7597_v5  ;;  %7003 = vmatprep.subr.mxu0 %v7597_v5 }
  0xe6   :  { %6993 = vmatpush3.msra.mxu1 %v157_v23  ;;  %7004 = vmatpush3.msra.mxu0 %v161_v24 }
  0xe7   :  { %6994 = vmatprep.subr.mxu1 %v7597_v5  ;;  %7005 = vmatprep.subr.mxu0 %v7597_v5 }
  0xe8   :  { %6995 = vmatpush3.msra.mxu1 %v156_v25  ;;  %6996 = vmatprep.mubr.msk.f32.mxu1 %vm7598_vm1, %v7597_v5 }
  0xe9   :  { %7006 = vmatpush3.msra.mxu0 %v160_v26  ;;  %7007 = vmatprep.mubr.msk.f32.mxu0 %vm7598_vm1, %v7597_v5 }
  0xea   :  { %6997 = vmatmul.mubr.msk.f32.vlgmr.msra.gmra.mxu1 %vm210_vm2, %v7805_v29  ;;  %7008 = vmatmul.mubr.msk.f32.vlgmr.msra.gmra.mxu0 %vm210_vm2, %v7805_v29 }
  0xeb   :  { %7010 = vmatprep.subr.mxu1 %v7597_v5  ;;  %7012 = vmatprep.mubr.msk.f32.mxu1 %vm7598_vm1, %v7597_v5 }
  0xec   :  { %7015 = vmatprep.subr.mxu0 %v7597_v5  ;;  %7017 = vmatprep.mubr.msk.f32.mxu0 %vm7598_vm1, %v7597_v5 }
 0x18d   :  { %v280_v31 = vpop.f32.mrf.mxu1  ;;  %v350_v32 = vpop.f32.mrf.mxu0 }
 0x18e   :  { %v7840_v33 = vadd.f32 %v6488_v30, %v280_v31  ;;  %v7847_v37 = vadd.f32 %v6489_v34, %v350_v32 }
 0x18f   :  { %v6932_v35 = vpop.f32.mrf.mxu1  ;;  %v6943_v36 = vpop.f32.mrf.mxu0 }
 0x190   :  { %778 = vrot.lane.b32.xlu0 %v7840_v33, %s7599_s30 }
 0x194   :  { %856 = vrot.lane.b32.xlu0 %v7847_v37, %s7599_s30 }
 0x196   :  { %v490_v39 = vpop.f32.mrf.mxu0  ;;  %v420_v40 = vpop.f32.mrf.mxu1 }
 0x197   :  { %v7854_v41 = vadd.f32 %v6490_v38, %v420_v40  ;;  %v7861_v45 = vadd.f32 %v6491_v42, %v490_v39 }
 0x198   :  { %v6954_v43 = vpop.f32.mrf.mxu1  ;;  %v6965_v44 = vpop.f32.mrf.mxu0 }
 0x199   :  { %933 = vrot.lane.b32.xlu1 %v7854_v41, %s7599_s30 }
 0x19d   :  { %1010 = vrot.lane.b32.xlu1 %v7861_v45, %s7599_s30 }
 0x1a0   :  { %v563_v46 = vpop.f32.mrf.mxu1  ;;  %v633_v47 = vpop.f32.mrf.mxu0 }
 0x1a1   :  { %v7865_v48 = vadd.f32 %v6488_v30, %v563_v46  ;;  %v7867_v49 = vadd.f32 %v6489_v34, %v633_v47 }
 0x1a2   :  { %v6976_v50 = vpop.f32.mrf.mxu1  ;;  %v6987_v51 = vpop.f32.mrf.mxu0 }
 0x1a3   :  { %1164 = vrot.lane.b32.xlu1 %v7867_v49, %s7599_s30  ;;  %1087 = vrot.lane.b32.xlu0 %v7865_v48, %s7599_s30 }
 0x1aa   :  { %v703_v52 = vpop.f32.mrf.mxu1  ;;  %v773_v53 = vpop.f32.mrf.mxu0 }
 0x1ab   :  { %v7873_v54 = vadd.f32 %v6490_v38, %v703_v52  ;;  %v7875_v55 = vadd.f32 %v6491_v42, %v773_v53 }
 0x1ac   :  { %v6998_v56 = vpop.f32.mrf.mxu1  ;;  %v7009_v57 = vpop.f32.mrf.mxu0 }
 0x1ad   :  { %1318 = vrot.lane.b32.xlu1 %v7875_v55, %s7599_s30  ;;  %1241 = vrot.lane.b32.xlu0 %v7873_v54, %s7599_s30 }
 0x202   :  { %v779_v58 = vpop.permute.xlu0 %778 }
 0x203   :  { %7011 = vmatpush3.xpose.msk.msra.mxu1 %vm780_vm3, %v779_v58 }
 0x204   :  { %7020 = vmatprep.subr.mxu1 %v7597_v5 }
 0x206   :  { %7013 = vmatmul.mubr.msk.f32.vlgmr.msra.gmra.mxu1 %vm780_vm3, %v7840_v33  ;;  %v857_v59 = vpop.permute.xlu0 %856 }
 0x207   :  { %7016 = vmatpush3.xpose.msk.msra.mxu0 %vm780_vm3, %v857_v59  ;;  %7022 = vmatprep.mubr.msk.f32.mxu1 %vm7598_vm1, %v7597_v5 }
 0x208   :  { %7025 = vmatprep.subr.mxu0 %v7597_v5 }
 0x20a   :  { %7018 = vmatmul.mubr.msk.f32.vlgmr.msra.gmra.mxu0 %vm780_vm3, %v7847_v37 }
 0x20b   :  { %v934_v60 = vpop.permute.xlu1 %933  ;;  %7027 = vmatprep.mubr.msk.f32.mxu0 %vm7598_vm1, %v7597_v5 }
 0x20c   :  { %7021 = vmatpush3.xpose.msk.msra.mxu1 %vm780_vm3, %v934_v60 }
 0x20d   :  { %7030 = vmatprep.subr.mxu1 %v7597_v5 }
 0x20f   :  { %7023 = vmatmul.mubr.msk.f32.vlgmr.msra.gmra.mxu1 %vm780_vm3, %v7854_v41  ;;  %v1011_v61 = vpop.permute.xlu1 %1010 }
 0x210   :  { %7026 = vmatpush3.xpose.msk.msra.mxu0 %vm780_vm3, %v1011_v61  ;;  %7032 = vmatprep.mubr.msk.f32.mxu1 %vm7598_vm1, %v7597_v5 }
 0x211   :  { %7035 = vmatprep.subr.mxu0 %v7597_v5 }
 0x213   :  { %7028 = vmatmul.mubr.msk.f32.vlgmr.msra.gmra.mxu0 %vm780_vm3, %v7861_v45 }
 0x214   :  { %7037 = vmatprep.mubr.msk.f32.mxu0 %vm7598_vm1, %v7597_v5 }
 0x215   :  { %v1165_v62 = vpop.permute.xlu1 %1164  ;;  %v1088_v63 = vpop.permute.xlu0 %1087 }
 0x216   :  { %7031 = vmatpush3.xpose.msk.msra.mxu1 %vm780_vm3, %v1088_v63  ;;  %7036 = vmatpush3.xpose.msk.msra.mxu0 %vm780_vm3, %v1165_v62 }
 0x217   :  { %7045 = vmatprep.subr.mxu0 %v7597_v5  ;;  %7040 = vmatprep.subr.mxu1 %v7597_v5 }
 0x219   :  { %7033 = vmatmul.mubr.msk.f32.vlgmr.msra.gmra.mxu1 %vm780_vm3, %v7865_v48  ;;  %7038 = vmatmul.mubr.msk.f32.vlgmr.msra.gmra.mxu0 %vm780_vm3, %v7867_v49 }
 0x21a   :  { %7042 = vmatprep.mubr.msk.f32.mxu1 %vm7598_vm1, %v7597_v5  ;;  %7047 = vmatprep.mubr.msk.f32.mxu0 %vm7598_vm1, %v7597_v5 }
 0x21f   :  { %v1319_v0 = vpop.permute.xlu1 %1318  ;;  %v1242_v1 = vpop.permute.xlu0 %1241 }
 0x220   :  { %7041 = vmatpush3.xpose.msk.msra.mxu1 %vm780_vm3, %v1242_v1  ;;  %7046 = vmatpush3.xpose.msk.msra.mxu0 %vm780_vm3, %v1319_v0 }
 0x221   :  { %7050 = vmatprep.subr.mxu1 %v7597_v5  ;;  %7055 = vmatprep.subr.mxu0 %v7597_v5 }
 0x223   :  { %7043 = vmatmul.mubr.msk.f32.vlgmr.msra.gmra.mxu1 %vm780_vm3, %v7873_v54  ;;  %7048 = vmatmul.mubr.msk.f32.vlgmr.msra.gmra.mxu0 %vm780_vm3, %v7875_v55 }
 0x224   :  { %7052 = vmatprep.mubr.msk.f32.mxu1 %vm7598_vm1, %v7597_v5  ;;  %7057 = vmatprep.mubr.msk.f32.mxu0 %vm7598_vm1, %v7597_v5 }
 0x2c6   :  { %v851_v2 = vpop.f32.mrf.mxu1 }
 0x2c7   :  { %v1394_v3 = vmul.f32 0.35355338, %v851_v2 }
 0x2c8   :  { %v7014_v4 = vpop.f32.mrf.mxu1 }
 0x2c9   :  { %v1402_v6 = vsel %vm780_vm3, %v1394_v3, -inf }
 0x2ca   :  { %v928_v7 = vpop.f32.mrf.mxu0  ;;  %1403 = vmax.xlane.f32.xlu0 %v1402_v6 }
 0x2cb   :  { %v1395_v8 = vmul.f32 0.35355338, %v928_v7 }
 0x2cc   :  { %v7019_v9 = vpop.f32.mrf.mxu0 }
 0x2cd   :  { %v1405_v10 = vsel %vm780_vm3, %v1395_v8, -inf }
 0x2ce   :  { %1406 = vmax.xlane.f32.xlu1 %v1405_v10 }
 0x2cf   :  { %v1005_v11 = vpop.f32.mrf.mxu1 }
 0x2d0   :  { %v1396_v12 = vmul.f32 0.35355338, %v1005_v11 }
 0x2d1   :  { %v7024_v13 = vpop.f32.mrf.mxu1 }
 0x2d2   :  { %v1408_v14 = vsel %vm780_vm3, %v1396_v12, -inf }
 0x2d3   :  { %v1082_v15 = vpop.f32.mrf.mxu0  ;;  %1409 = vmax.xlane.f32.xlu0 %v1408_v14 }
 0x2d4   :  { %v1397_v16 = vmul.f32 0.35355338, %v1082_v15 }
 0x2d5   :  { %v7029_v17 = vpop.f32.mrf.mxu0 }
 0x2d6   :  { %v1411_v19 = vsel %vm780_vm3, %v1397_v16, -inf }
 0x2d7   :  { %1412 = vmax.xlane.f32.xlu0 %v1411_v19 }
 0x2d9   :  { %v1236_v20 = vpop.f32.mrf.mxu0  ;;  %v1159_v21 = vpop.f32.mrf.mxu1 }
 0x2da   :  { %v1399_v22 = vmul.f32 0.35355338, %v1236_v20  ;;  %v1398_v23 = vmul.f32 0.35355338, %v1159_v21 }
 0x2db   :  { %v7034_v24 = vpop.f32.mrf.mxu1  ;;  %v7039_v25 = vpop.f32.mrf.mxu0 }
 0x2dc   :  { %v1417_v26 = vsel %vm780_vm3, %v1399_v22, -inf  ;;  %v1414_v27 = vsel %vm780_vm3, %v1398_v23, -inf }
 0x2dd   :  { %1418 = vmax.xlane.f32.xlu0 %v1417_v26  ;;  %1415 = vmax.xlane.f32.xlu1 %v1414_v27 }
 0x2e3   :  { %v1313_v28 = vpop.f32.mrf.mxu1  ;;  %v1390_v30 = vpop.f32.mrf.mxu0 }
 0x2e4   :  { %v1400_v31 = vmul.f32 0.35355338, %v1313_v28  ;;  %v1401_v32 = vmul.f32 0.35355338, %v1390_v30 }
 0x2e5   :  { %v7044_v34 = vpop.f32.mrf.mxu1  ;;  %v7049_v35 = vpop.f32.mrf.mxu0 }
 0x2e6   :  { %v1423_v36 = vsel %vm780_vm3, %v1401_v32, -inf  ;;  %v1420_v38 = vsel %vm780_vm3, %v1400_v31, -inf }
 0x2e7   :  { %1424 = vmax.xlane.f32.xlu0 %v1423_v36  ;;  %1421 = vmax.xlane.f32.xlu1 %v1420_v38 }
 0x2f8   :  { %1490 = vrot.lane.b32.xlu1 %v7840_v33, %s7600_s19 }
 0x2fc   :  { %1642 = vrot.lane.b32.xlu1 %v7854_v41, %s7600_s19 }
 0x2fd   :  { %1566 = vrot.lane.b32.xlu0 %v7847_v37, %s7600_s19 }
 0x300   :  { %1718 = vrot.lane.b32.xlu1 %v7861_v45, %s7600_s19 }
 0x301   :  { %1794 = vrot.lane.b32.xlu0 %v7865_v48, %s7600_s19 }
 0x304   :  { %1870 = vrot.lane.b32.xlu1 %v7867_v49, %s7600_s19 }
 0x353   :  { %v1404_v39 = vpop.xlane.xlu0 %1403 }
 0x354   :  { %v1426_v40 = vsub.f32 %v1394_v3, %v1404_v39 }
 0x356   :  { %v1434_v42 = vmul.f32 1.442695, %v1426_v40 }
 0x357   :  { %v1407_v43 = vpop.xlane.xlu1 %1406 }
 0x358   :  { %7491 = vpow2.f32 %v1434_v42  ;;  %v1427_v33 = vsub.f32 %v1395_v8, %v1407_v43 }
 0x35a   :  { %v1436_v44 = vmul.f32 1.442695, %v1427_v33 }
 0x35c   :  { %7493 = vpow2.f32 %v1436_v44  ;;  %v1410_v41 = vpop.xlane.xlu0 %1409 }
 0x35d   :  { %v1428_v46 = vsub.f32 %v1396_v12, %v1410_v41 }
 0x35f   :  { %v1438_v37 = vmul.f32 1.442695, %v1428_v46 }
 0x360   :  { %v1413_v47 = vpop.xlane.xlu0 %1412 }
 0x361   :  { %7495 = vpow2.f32 %v1438_v37  ;;  %v1429_v45 = vsub.f32 %v1397_v16, %v1413_v47 }
 0x363   :  { %v1440_v50 = vmul.f32 1.442695, %v1429_v45 }
 0x365   :  { %v7492_v51 = vpop.eup %7491  ;;  %7497 = vpow2.f32 %v1440_v50  ;;  %v168_v50 = vld [vmem:[%s8765_s6] sm:$0xff] }
 0x366   :  { %v1419_v48 = vpop.xlane.xlu0 %1418  ;;  %v1416_v52 = vpop.xlane.xlu1 %1415  ;;  %v1450_v49 = vsel %vm780_vm3, %v7492_v51, 0.0 }
 0x367   :  { %v1431_v53 = vsub.f32 %v1399_v22, %v1419_v48  ;;  %v1430_v56 = vsub.f32 %v1398_v23, %v1416_v52  ;;  %1451 = vadd.xlane.f32.xlu1 %v1450_v49  ;;  %v170_v48 = vld [vmem:[%s8765_s6 + $0x10] sm:$0xff] }
 0x369   :  { %v7494_v57 = vpop.eup %7493  ;;  %v1444_v58 = vmul.f32 1.442695, %v1431_v53  ;;  %v1442_v59 = vmul.f32 1.442695, %v1430_v56  ;;  %v171_v53 = vld [vmem:[%s8765_s6 + $0x18] sm:$0xff] }
 0x36a   :  { %v1453_v60 = vsel %vm780_vm3, %v7494_v57, 0.0 }
 0x36b   :  { %7499 = vpow2.f32 %v1444_v58  ;;  %1454 = vadd.xlane.f32.xlu0 %v1453_v60 }
 0x36c   :  { %7501 = vpow2.f32 %v1442_v59 }
 0x36e   :  { %v7951_v61 = vpop.eup %7495 }
 0x36f   :  { %v1456_v62 = vsel %vm780_vm3, %v7951_v61, 0.0 }
 0x370   :  { %v1425_v63 = vpop.xlane.xlu0 %1424  ;;  %v1422_v0 = vpop.xlane.xlu1 %1421  ;;  %1457 = vadd.xlane.f32.xlu1 %v1456_v62 }
 0x371   :  { %v1433_v1 = vsub.f32 %v1401_v32, %v1425_v63  ;;  %v1432_v2 = vsub.f32 %v1400_v31, %v1422_v0 }
 0x372   :  { %v7498_v3 = vpop.eup %7497 }
 0x373   :  { %v1448_v4 = vmul.f32 1.442695, %v1433_v1  ;;  %v1446_v6 = vmul.f32 1.442695, %v1432_v2  ;;  %v1459_v7 = vsel %vm780_vm3, %v7498_v3, 0.0 }
 0x374   :  { %v1567_v8 = vpop.permute.xlu0 %1566  ;;  %v1491_v9 = vpop.permute.xlu1 %1490  ;;  %1460 = vadd.xlane.f32.xlu0 %v1459_v7 }
 0x375   :  { %7503 = vpow2.f32 %v1448_v4  ;;  %7051 = vmatpush3.msra.mxu1 %v1491_v9  ;;  %7056 = vmatpush3.msra.mxu0 %v1567_v8  ;;  %v2696_v8 = vlaneseq }
 0x376   :  { %7505 = vpow2.f32 %v1446_v6  ;;  %7060 = vmatprep.subr.mxu1 %v7597_v5  ;;  %7065 = vmatprep.subr.mxu0 %v7597_v5 }
 0x378   :  { %v7500_v10 = vpop.eup %7499  ;;  %v1643_v19 = vpop.permute.xlu1 %1642 }
 0x379   :  { %v7502_v11 = vpop.eup %7501  ;;  %v1465_v12 = vsel %vm780_vm3, %v7500_v10, 0.0  ;;  %v1795_v22 = vpop.permute.xlu0 %1794 }
 0x37a   :  { %1466 = vadd.xlane.f32.xlu0 %v1465_v12  ;;  %v1462_v13 = vsel %vm780_vm3, %v7502_v11, 0.0 }
 0x37b   :  { %1463 = vadd.xlane.f32.xlu1 %v1462_v13 }
 0x37c   :  { %v1719_v20 = vpop.permute.xlu1 %1718 }
 0x380   :  { %v1871_v21 = vpop.permute.xlu1 %1870 }
 0x382   :  { %v7960_v14 = vpop.eup %7503 }
 0x383   :  { %v7962_v15 = vpop.eup %7505  ;;  %v1471_v16 = vsel %vm780_vm3, %v7960_v14, 0.0 }
 0x384   :  { %1472 = vadd.xlane.f32.xlu0 %v1471_v16  ;;  %v1468_v17 = vsel %vm780_vm3, %v7962_v15, 0.0 }
 0x385   :  { %1469 = vadd.xlane.f32.xlu1 %v1468_v17 }
 0x396   :  { %2022 = vrot.lane.b32.xlu1 %v7875_v55, %s7600_s19 }
 0x39a   :  { %1946 = vrot.lane.b32.xlu0 %v7873_v54, %s7600_s19 }
 0x3f0   :  { %v1452_v23 = vpop.xlane.xlu1 %1451 }
 0x3f1   :  { %7507 = vrcp.f32 %v1452_v23 }
 0x3f4   :  { %v1455_v24 = vpop.xlane.xlu0 %1454 }
 0x3f5   :  { %7509 = vrcp.f32 %v1455_v24 }
 0x3f9   :  { %v1458_v25 = vpop.xlane.xlu1 %1457 }
 0x3fa   :  { %7511 = vrcp.f32 %v1458_v25 }
 0x3fd   :  { %v1461_v26 = vpop.xlane.xlu0 %1460 }
 0x3fe   :  { %v7508_v27 = vpop.eup %7507  ;;  %7513 = vrcp.f32 %v1461_v26 }
 0x3ff   :  { %v1482_v28 = vmul.f32 %v7508_v27, %v7492_v51  ;;  %v169_v51 = vld [vmem:[%s8765_s6 + $0x8] sm:$0xff] }
 0x401   :  { %7053 = vmatmul.mubr.msk.f32.vlgmr.msra.gmra.mxu1 %vm780_vm3, %v1482_v28 }
 0x402   :  { %v7510_v55 = vpop.eup %7509  ;;  %7061 = vmatpush3.msra.mxu1 %v1643_v19  ;;  %7062 = vmatprep.mubr.msk.f32.mxu1 %vm7598_vm1, %v7597_v5 }
 0x403   :  { %v1467_v54 = vpop.xlane.xlu0 %1466  ;;  %v1483_v30 = vmul.f32 %v7510_v55, %v7494_v57  ;;  %7070 = vmatprep.subr.mxu1 %v7597_v5 }
 0x404   :  { %7515 = vrcp.f32 %v1467_v54  ;;  %v1464_v31 = vpop.xlane.xlu1 %1463 }
 0x405   :  { %7517 = vrcp.f32 %v1464_v31  ;;  %7058 = vmatmul.mubr.msk.f32.vlgmr.msra.gmra.mxu0 %vm780_vm3, %v1483_v30 }
 0x406   :  { %7066 = vmatpush3.msra.mxu0 %v1719_v20  ;;  %7067 = vmatprep.mubr.msk.f32.mxu0 %vm7598_vm1, %v7597_v5  ;;  %v8052_v20 = vld [vmem:[%s8766_s7] sm:$0x3f] }
 0x407   :  { %v7512_v32 = vpop.eup %7511  ;;  %7075 = vmatprep.subr.mxu0 %v7597_v5 }
 0x408   :  { %v1484_v34 = vmul.f32 %v7512_v32, %v7951_v61 }
 0x40a   :  { %7063 = vmatmul.mubr.msk.f32.vlgmr.msra.gmra.mxu1 %vm780_vm3, %v1484_v34 }
 0x40b   :  { %v7514_v35 = vpop.eup %7513  ;;  %7071 = vmatpush3.msra.mxu1 %v1795_v22  ;;  %7072 = vmatprep.mubr.msk.f32.mxu1 %vm7598_vm1, %v7597_v5 }
 0x40c   :  { %v1485_v36 = vmul.f32 %v7514_v35, %v7498_v3  ;;  %7080 = vmatprep.subr.mxu1 %v7597_v5 }
 0x40d   :  { %v1473_v38 = vpop.xlane.xlu0 %1472 }
 0x40e   :  { %7519 = vrcp.f32 %v1473_v38  ;;  %v1470_v39 = vpop.xlane.xlu1 %1469  ;;  %7068 = vmatmul.mubr.msk.f32.vlgmr.msra.gmra.mxu0 %vm780_vm3, %v1485_v36 }
 0x40f   :  { %7521 = vrcp.f32 %v1470_v39  ;;  %7076 = vmatpush3.msra.mxu0 %v1871_v21  ;;  %7077 = vmatprep.mubr.msk.f32.mxu0 %vm7598_vm1, %v7597_v5 }
 0x410   :  { %7085 = vmatprep.subr.mxu0 %v7597_v5 }
 0x411   :  { %v7516_v40 = vpop.eup %7515  ;;  %v1947_v41 = vpop.permute.xlu0 %1946 }
 0x412   :  { %v7518_v42 = vpop.eup %7517  ;;  %v1487_v43 = vmul.f32 %v7516_v40, %v7500_v10  ;;  %v2023_v44 = vpop.permute.xlu1 %2022 }
 0x413   :  { %v1486_v33 = vmul.f32 %v7518_v42, %v7502_v11  ;;  %v8043_v11 = vshrl.u32 %v2696_v8, 7 }
 0x414   :  { %7078 = vmatmul.mubr.msk.f32.vlgmr.msra.gmra.mxu0 %vm780_vm3, %v1487_v43 }
 0x415   :  { %7073 = vmatmul.mubr.msk.f32.vlgmr.msra.gmra.mxu1 %vm780_vm3, %v1486_v33  ;;  %7086 = vmatpush3.msra.mxu0 %v2023_v44  ;;  %v2698_v17 = vsub.s32 0, %v8043_v11 }
 0x416   :  { %7081 = vmatpush3.msra.mxu1 %v1947_v41  ;;  %7082 = vmatprep.mubr.msk.f32.mxu1 %vm7598_vm1, %v7597_v5 }
 0x417   :  { %7087 = vmatprep.mubr.msk.f32.mxu0 %vm7598_vm1, %v7597_v5  ;;  %7090 = vmatprep.subr.mxu1 %v7597_v5  ;;  %v2699_v24 = vrot.slane %v8052_v20, %v2698_v17 }
 0x418   :  { %7095 = vmatprep.subr.mxu0 %v7597_v5 }
 0x41b   :  { %v7520_v46 = vpop.eup %7519 }
 0x41c   :  { %v7522_v37 = vpop.eup %7521  ;;  %v1489_v47 = vmul.f32 %v7520_v46, %v7960_v14 }
 0x41d   :  { %v1488_v45 = vmul.f32 %v7522_v37, %v7962_v15 }
 0x41e   :  { %7088 = vmatmul.mubr.msk.f32.vlgmr.msra.gmra.mxu0 %vm780_vm3, %v1489_v47 }
 0x41f   :  { %7083 = vmatmul.mubr.msk.f32.vlgmr.msra.gmra.mxu1 %vm780_vm3, %v1488_v45  ;;  %7097 = vmatprep.mubr.msk.f32.mxu0 %vm7598_vm1, %v7597_v5 }
 0x420   :  { %7092 = vmatprep.mubr.msk.f32.mxu1 %vm7598_vm1, %v7597_v5  ;;  %7091 = vmatpush3.msra.mxu1 %v168_v50 }
 0x421   :  { %7100 = vmatprep.subr.mxu1 %v7597_v5  ;;  %7096 = vmatpush3.msra.mxu0 %v169_v51 }
 0x422   :  { %7105 = vmatprep.subr.mxu0 %v7597_v5 }
 0x4c1   :  { %v1562_v52 = vpop.f32.mrf.mxu1 }
 0x4c2   :  { %7093 = vmatmul.mubr.msk.f32.vlgmr.msra.gmra.mxu1 %vm780_vm3, %v1562_v52 }
 0x4c3   :  { %v7054_v49 = vpop.f32.mrf.mxu1  ;;  %7101 = vmatpush3.msra.mxu1 %v170_v48  ;;  %7102 = vmatprep.mubr.msk.f32.mxu1 %vm7598_vm1, %v7597_v5 }
 0x4c4   :  { %7110 = vmatprep.subr.mxu1 %v7597_v5 }
 0x4c5   :  { %v1638_v56 = vpop.f32.mrf.mxu0 }
 0x4c6   :  { %7098 = vmatmul.mubr.msk.f32.vlgmr.msra.gmra.mxu0 %vm780_vm3, %v1638_v56 }
 0x4c7   :  { %v7059_v57 = vpop.f32.mrf.mxu0  ;;  %7106 = vmatpush3.msra.mxu0 %v171_v53  ;;  %7107 = vmatprep.mubr.msk.f32.mxu0 %vm7598_vm1, %v7597_v5 }
 0x4c8   :  { %7115 = vmatprep.subr.mxu0 %v7597_v5 }
 0x4ca   :  { %v1714_v58 = vpop.f32.mrf.mxu1 }
 0x4cb   :  { %7103 = vmatmul.mubr.msk.f32.vlgmr.msra.gmra.mxu1 %vm780_vm3, %v1714_v58 }
 0x4cc   :  { %v7064_v59 = vpop.f32.mrf.mxu1  ;;  %7111 = vmatpush3.msra.mxu1 %v168_v50  ;;  %7112 = vmatprep.mubr.msk.f32.mxu1 %vm7598_vm1, %v7597_v5 }
 0x4cd   :  { %7120 = vmatprep.subr.mxu1 %v7597_v5  ;;  %v175_v59 = vld [vmem:[%s8767_s8 + $0x10] sm:$0xff] }
 0x4ce   :  { %v1790_v60 = vpop.f32.mrf.mxu0 }
 0x4cf   :  { %7108 = vmatmul.mubr.msk.f32.vlgmr.msra.gmra.mxu0 %vm780_vm3, %v1790_v60  ;;  %v174_v60 = vld [vmem:[%s8767_s8 + $0x8] sm:$0xff] }
 0x4d0   :  { %v7069_v61 = vpop.f32.mrf.mxu0  ;;  %7116 = vmatpush3.msra.mxu0 %v169_v51  ;;  %7117 = vmatprep.mubr.msk.f32.mxu0 %vm7598_vm1, %v7597_v5 }
 0x4d1   :  { %7125 = vmatprep.subr.mxu0 %v7597_v5  ;;  %v173_v61 = vld [vmem:[%s8767_s8] sm:$0xff] }
 0x4d4   :  { %v1942_v62 = vpop.f32.mrf.mxu0 }
 0x4d5   :  { %v1866_v63 = vpop.f32.mrf.mxu1  ;;  %7118 = vmatmul.mubr.msk.f32.vlgmr.msra.gmra.mxu0 %vm780_vm3, %v1942_v62  ;;  %v185_v62 = vld [vmem:[%s8769_s10 + $0x38] sm:$0xff] }
 0x4d6   :  { %7113 = vmatmul.mubr.msk.f32.vlgmr.msra.gmra.mxu1 %vm780_vm3, %v1866_v63  ;;  %v7079_v0 = vpop.f32.mrf.mxu0  ;;  %7126 = vmatpush3.msra.mxu0 %v171_v53  ;;  %v184_v63 = vld [vmem:[%s8769_s10 + $0x30] sm:$0xff] }
 0x4d7   :  { %v7074_v1 = vpop.f32.mrf.mxu1  ;;  %7121 = vmatpush3.msra.mxu1 %v170_v48  ;;  %7122 = vmatprep.mubr.msk.f32.mxu1 %vm7598_vm1, %v7597_v5  ;;  %v183_v0 = vld [vmem:[%s8769_s10 + $0x28] sm:$0xff] }
 0x4d8   :  { %7127 = vmatprep.mubr.msk.f32.mxu0 %vm7598_vm1, %v7597_v5  ;;  %7141 = vmatprep.subr.mxu0 %v185_v62  ;;  %v182_v1 = vld [vmem:[%s8769_s10 + $0x20] sm:$0xff] }
 0x4de   :  { %v2094_v2 = vpop.f32.mrf.mxu0 }
 0x4df   :  { %v2018_v3 = vpop.f32.mrf.mxu1  ;;  %7128 = vmatmul.mubr.msk.f32.vlgmr.msra.gmra.mxu0 %vm780_vm3, %v2094_v2 }
 0x4e0   :  { %7123 = vmatmul.mubr.msk.f32.vlgmr.msra.gmra.mxu1 %vm780_vm3, %v2018_v3  ;;  %v7089_v4 = vpop.f32.mrf.mxu0  ;;  %7142 = vmatpush3.msra.mxu0 %v185_v62  ;;  %v8169_v62 = vld [vmem:[%s8763_s4 + $0xc0] sm:$0xff] }
 0x4e1   :  { %v7084_v6 = vpop.f32.mrf.mxu1  ;;  %7143 = vmatprep.subr.mxu0 %v184_v63 }
 0x4e2   :  { %7144 = vmatpush3.msra.mxu0 %v184_v63  ;;  %v2733_v6 = vsub.s32 1, %v8043_v11 }
 0x4e3   :  { %7145 = vmatprep.subr.mxu0 %v183_v0 }
 0x4e4   :  { %7146 = vmatpush3.msra.mxu0 %v183_v0  ;;  %v2734_v8 = vrot.slane %v8052_v20, %v2733_v6 }
 0x4e5   :  { %7147 = vmatprep.subr.mxu0 %v182_v1 }
 0x4e6   :  { %7148 = vmatpush3.msra.mxu0 %v182_v1 }
 0x582   :  { %v2167_v7 = vpop.f32.mrf.mxu1 }
 0x583   :  { %v2682_v14 = vsel %vm210_vm2, %v2167_v7, 0.0  ;;  %v2739_v7 = vsub.s32 2, %v8043_v11 }
 0x584   :  { %v7094_v9 = vpop.f32.mrf.mxu1 }
 0x586   :  { %v2240_v10 = vpop.f32.mrf.mxu0 }
 0x587   :  { %v2683_v12 = vsel %vm210_vm2, %v2240_v10, 0.0 }
 0x588   :  { %v7099_v13 = vpop.f32.mrf.mxu0  ;;  %v2684_v15 = vadd.f32 %v2683_v12, %v2682_v14 }
 0x589   :  { %v2740_v13 = vrot.slane %v8052_v20, %v2739_v7 }
 0x58b   :  { %v2313_v16 = vpop.f32.mrf.mxu1 }
 0x58c   :  { %v2685_v19 = vsel %vm210_vm2, %v2313_v16, 0.0 }
 0x58d   :  { %v7104_v21 = vpop.f32.mrf.mxu1  ;;  %v2686_v22 = vadd.f32 %v2685_v19, %v2684_v15 }
 0x58f   :  { %v2386_v23 = vpop.f32.mrf.mxu0 }
 0x590   :  { %v2687_v25 = vsel %vm210_vm2, %v2386_v23, 0.0 }
 0x591   :  { %v2688_v26 = vadd.f32 %v2687_v25, %v2686_v22  ;;  %v7109_v27 = vpop.f32.mrf.mxu0  ;;  %v181_v25 = vld [vmem:[%s8769_s10 + $0x18] sm:$0xff] }
 0x592   :  { %7149 = vmatprep.subr.mxu0 %v181_v25  ;;  %v179_v27 = vld [vmem:[%s8769_s10 + $0x8] sm:$0xff] }
 0x593   :  { %v2700_v28 = vadd.f32 %v2699_v24, %v2688_v26  ;;  %7150 = vmatpush3.msra.mxu0 %v181_v25  ;;  %v180_v26 = vld [vmem:[%s8769_s10 + $0x10] sm:$0xff] }
 0x594   :  { %7151 = vmatprep.subr.mxu0 %v180_v26 }
 0x595   :  { %v2532_v55 = vpop.f32.mrf.mxu0  ;;  %v2702_v54 = vadd.f32 %v2700_v28, %v7747_v18  ;;  %7152 = vmatpush3.msra.mxu0 %v180_v26  ;;  %v178_v28 = vld [vmem:[%s8769_s10] sm:$0xff] }
 0x596   :  { %v2459_v30 = vpop.f32.mrf.mxu1  ;;  %v2690_v36 = vsel %vm210_vm2, %v2532_v55, 0.0  ;;  %7153 = vmatprep.subr.mxu0 %v179_v27  ;;  %v6532_v55 = vld [vmem:[%s8768_s9] ss:$0 sm:$0xff] }
 0x597   :  { %v7119_v31 = vpop.f32.mrf.mxu0  ;;  %v2704_v32 = vsel %vm210_vm2, %v2702_v54, 0.0  ;;  %v2689_v35 = vsel %vm210_vm2, %v2459_v30, 0.0  ;;  %7154 = vmatpush3.msra.mxu0 %v179_v27  ;;  %v6552_v27 = vld [vmem:[%s8763_s4 + $0xf8] sm:$0xff] }
 0x598   :  { %v7114_v34 = vpop.f32.mrf.mxu1  ;;  %2705 = vadd.xlane.f32.xlu0 %v2704_v32  ;;  %v2691_v39 = vadd.f32 %v2690_v36, %v2689_v35  ;;  %7155 = vmatprep.subr.mxu0 %v178_v28  ;;  %v2834_v36 = vsub.s32 3, %v8043_v11 }
 0x599   :  { %7156 = vmatpush3.msra.mxu0 %v178_v28  ;;  %v6551_v28 = vld [vmem:[%s8763_s4 + $0xf0] sm:$0xff] }
 0x59a   :  { %7182 = vmatprep.subr.mxu0 %v7597_v5 }
 0x59f   :  { %v2678_v38 = vpop.f32.mrf.mxu0 }
 0x5a0   :  { %v2605_v40 = vpop.f32.mrf.mxu1  ;;  %v2694_v18 = vsel %vm210_vm2, %v2678_v38, 0.0  ;;  %v2835_v38 = vrot.slane %v8052_v20, %v2834_v36 }
 0x5a1   :  { %v2692_v42 = vsel %vm210_vm2, %v2605_v40, 0.0  ;;  %v7129_v43 = vpop.f32.mrf.mxu0 }
 0x5a2   :  { %v2693_v33 = vadd.f32 %v2692_v42, %v2691_v39  ;;  %v7124_v44 = vpop.f32.mrf.mxu1 }
 0x5a4   :  { %v2695_v41 = vadd.f32 %v2694_v18, %v2693_v33 }
 0x5a6   :  { %v2701_v46 = vadd.f32 %v2699_v24, %v2695_v41 }
 0x5a8   :  { %v2703_v37 = vadd.f32 %v2701_v46, %v7805_v29  ;;  %v176_v29 = vld [vmem:[%s8767_s8 + $0x18] sm:$0xff] }
 0x5a9   :  { %7130 = vmatprep.subr.mxu1 %v176_v29 }
 0x5aa   :  { %v2707_v47 = vsel %vm210_vm2, %v2703_v37, 0.0  ;;  %7131 = vmatpush3.msra.mxu1 %v176_v29  ;;  %v8150_v29 = vld [vmem:[%s8763_s4 + $0xd0] sm:$0xff] }
 0x5ab   :  { %2708 = vadd.xlane.f32.xlu1 %v2707_v47  ;;  %7132 = vmatprep.subr.mxu1 %v175_v59 }
 0x5ac   :  { %7133 = vmatpush3.msra.mxu1 %v175_v59  ;;  %v6538_v59 = vld [vmem:[%s8763_s4 + $0x88] sm:$0xff] }
 0x5ad   :  { %7134 = vmatprep.subr.mxu1 %v174_v60 }
 0x5ae   :  { %7135 = vmatpush3.msra.mxu1 %v174_v60  ;;  %v8159_v60 = vld [vmem:[%s8763_s4 + $0xc8] sm:$0xff] }
 0x5af   :  { %7136 = vmatprep.subr.mxu1 %v173_v61 }
 0x5b0   :  { %7137 = vmatpush3.msra.mxu1 %v173_v61  ;;  %v6537_v61 = vld [vmem:[%s8763_s4 + $0x80] sm:$0xff] }
 0x5b1   :  { %7160 = vmatprep.subr.mxu1 %v7597_v5 }
 0x621   :  { %v2706_v45 = vpop.xlane.xlu0 %2705 }
 0x622   :  { %v2711_v50 = vmul.f32 0.03125, %v2706_v45 }
 0x624   :  { %v2713_v51 = vsub.f32 %v2702_v54, %v2711_v50 }
 0x626   :  { %v2715_v48 = vmul.f32 %v2713_v51, %v2713_v51 }
 0x628   :  { %v2717_v52 = vsel %vm210_vm2, %v2715_v48, 0.0 }
 0x629   :  { %2718 = vadd.xlane.f32.xlu0 %v2717_v52 }
 0x634   :  { %v2709_v49 = vpop.xlane.xlu1 %2708 }
 0x635   :  { %v2712_v53 = vmul.f32 0.03125, %v2709_v49 }
 0x637   :  { %v2714_v56 = vsub.f32 %v2703_v37, %v2712_v53 }
 0x639   :  { %v2716_v57 = vmul.f32 %v2714_v56, %v2714_v56 }
 0x63b   :  { %v2720_v58 = vsel %vm210_vm2, %v2716_v57, 0.0  ;;  %v8139_v57 = vld [vmem:[%s8763_s4 + $0xd8] sm:$0xff] }
 0x63c   :  { %2721 = vadd.xlane.f32.xlu0 %v2720_v58  ;;  %v6539_v58 = vld [vmem:[%s8763_s4 + $0x90] sm:$0xff] }
 0x6b2   :  { %v2719_v2 = vpop.xlane.xlu0 %2718 }
 0x6b3   :  { %v2723_v3 = vmul.f32 0.03125, %v2719_v2 }
 0x6b5   :  { %v2725_v4 = vadd.f32 1e-05, %v2723_v3 }
 0x6b7   :  { %7523 = vrsqrt.f32 %v2725_v4 }
 0x6c4   :  { %v7524_v9 = vpop.eup %7523 }
 0x6c5   :  { %v2722_v10 = vpop.xlane.xlu0 %2721  ;;  %v2729_v12 = vmul.f32 %v7524_v9, %v2713_v51  ;;  %v2954_v9 = vsub.s32 5, %v8043_v11 }
 0x6c6   :  { %v2724_v14 = vmul.f32 0.03125, %v2722_v10 }
 0x6c7   :  { %v2735_v15 = vmul.f32 %v2734_v8, %v2729_v12 }
 0x6c8   :  { %v2726_v16 = vadd.f32 1e-05, %v2724_v14 }
 0x6c9   :  { %v2741_v19 = vadd.f32 %v2740_v13, %v2735_v15  ;;  %v2955_v15 = vrot.slane %v8052_v20, %v2954_v9 }
 0x6ca   :  { %7525 = vrsqrt.f32 %v2726_v16 }
 0x6cb   :  { %7138 = vmatprep.mubr.msk.f32.mxu1 %vm210_vm2, %v2741_v19 }
 0x6d7   :  { %v7526_v21 = vpop.eup %7525 }
 0x6d8   :  { %v2730_v22 = vmul.f32 %v7526_v21, %v2714_v56  ;;  %v6540_v56 = vld [vmem:[%s8763_s4 + $0x98] sm:$0xff] }
 0x6d9   :  { %v6544_v21 = vld [vmem:[%s8763_s4 + $0xb8] sm:$0xff] }
 0x6da   :  { %v2736_v23 = vmul.f32 %v2734_v8, %v2730_v22  ;;  %v2948_v8 = vsub.s32 4, %v8043_v11 }
 0x6dc   :  { %v2742_v24 = vadd.f32 %v2740_v13, %v2736_v23  ;;  %v2949_v13 = vrot.slane %v8052_v20, %v2948_v8  ;;  %v6543_v23 = vld [vmem:[%s8763_s4 + $0xb0] sm:$0xff]  ;;  %v6542_v20 = vld [vmem:[%s8763_s4 + $0xa8] sm:$0xff] }
 0x6de   :  { %7139 = vmatmul.mubr.msk.f32.vlgmr.msra.gmra.mxu1 %vm210_vm2, %v2742_v24 }
 0x6df   :  { %7168 = vmatprep.mubr.msk.f32.mxu1 %vm7598_vm1, %v7597_v5  ;;  %7161 = vmatpush3.msra.mxu1 %v6540_v56 }
 0x6e0   :  { %7162 = vmatprep.subr.mxu1 %v7597_v5 }
 0x6e1   :  { %7163 = vmatpush3.msra.mxu1 %v6539_v58 }
 0x6e2   :  { %7164 = vmatprep.subr.mxu1 %v7597_v5 }
 0x6e3   :  { %7165 = vmatpush3.msra.mxu1 %v6538_v59 }
 0x6e4   :  { %7166 = vmatprep.subr.mxu1 %v7597_v5 }
 0x6e5   :  { %7167 = vmatpush3.msra.mxu1 %v6537_v61 }
 0x6e6   :  { %7171 = vmatprep.subr.mxu1 %v7597_v5 }
 0x79e   :  { %v7140_v54 = vpop.f32.mrf.mxu1 }
 0x79f   :  { %v2827_v30 = vadd.f32 %v7140_v54, %v6532_v55  ;;  %v6549_v54 = vld [vmem:[%s8763_s4 + $0xe0] sm:$0xff] }
 0x7a0   :  { %v2821_v31 = vpop.f32.mrf.mxu1 }
 0x7a1   :  { %v2822_v32 = vadd.f32 %v6532_v55, %v2821_v31  ;;  %v2831_v35 = vmax.f32 %v2827_v30, 0.0  ;;  %v6550_v55 = vld [vmem:[%s8763_s4 + $0xe8] sm:$0xff]  ;;  %v6575_v30 = vld [vmem:[%s8764_s5 + $0x4] ss:$0 sm:$0xff] }
 0x7a3   :  { %v2830_v34 = vmax.f32 %v2822_v32, 0.0 }
 0x7a5   :  { %7157 = vmatprep.mubr.msk.f32.mxu0 %vm2836_vm4, %v2830_v34 }
 0x7a6   :  { %7158 = vmatmul.mubr.msk.f32.vlgmr.msra.gmra.mxu0 %vm2836_vm4, %v2831_v35  ;;  %v6577_v35 = vld [vmem:[%s8764_s5 + $0x6] ss:$0 sm:$0xff] }
 0x7a7   :  { %7190 = vmatprep.mubr.msk.f32.mxu0 %vm7598_vm1, %v7597_v5  ;;  %7183 = vmatpush3.msra.mxu0 %v8139_v57 }
 0x7a8   :  { %7184 = vmatprep.subr.mxu0 %v7597_v5 }
 0x7a9   :  { %7185 = vmatpush3.msra.mxu0 %v8150_v29 }
 0x7aa   :  { %7186 = vmatprep.subr.mxu0 %v7597_v5 }
 0x7ab   :  { %7187 = vmatpush3.msra.mxu0 %v8159_v60 }
 0x7ac   :  { %7188 = vmatprep.subr.mxu0 %v7597_v5 }
 0x7ad   :  { %7189 = vmatpush3.msra.mxu0 %v8169_v62 }
 0x7ae   :  { %7204 = vmatprep.subr.mxu0 %v7597_v5 }
 0x866   :  { %v7159_v39 = vpop.f32.mrf.mxu0 }
 0x867   :  { %v2915_v40 = vadd.f32 %v7159_v39, %v2835_v38 }
 0x868   :  { %v2909_v42 = vpop.f32.mrf.mxu0 }
 0x869   :  { %v2910_v43 = vadd.f32 %v2909_v42, %v2835_v38  ;;  %v2919_v33 = vadd.f32 %v2915_v40, %v2742_v24  ;;  %v6541_v24 = vld [vmem:[%s8763_s4 + $0xa0] sm:$0xff] }
 0x86a   :  { %v6576_v42 = vld [vmem:[%s8764_s5 + $0x5] ss:$0 sm:$0xff] }
 0x86b   :  { %v2923_v44 = vsel %vm210_vm2, %v2919_v33, 0.0  ;;  %v2918_v18 = vadd.f32 %v2910_v43, %v2741_v19 }
 0x86c   :  { %2924 = vadd.xlane.f32.xlu0 %v2923_v44 }
 0x86d   :  { %v2920_v41 = vsel %vm210_vm2, %v2918_v18, 0.0 }
 0x86e   :  { %2921 = vadd.xlane.f32.xlu1 %v2920_v41 }
 0x8f5   :  { %v2925_v46 = vpop.xlane.xlu0 %2924 }
 0x8f6   :  { %v2927_v37 = vmul.f32 0.03125, %v2925_v46 }
 0x8f7   :  { %v2922_v47 = vpop.xlane.xlu1 %2921 }
 0x8f8   :  { %v2929_v45 = vsub.f32 %v2919_v33, %v2927_v37  ;;  %v2926_v50 = vmul.f32 0.03125, %v2922_v47  ;;  %v6578_v37 = vld [vmem:[%s8764_s5 + $0x7] ss:$0 sm:$0xff]  ;;  %s7601_s5 = smov [#allocation2]  }
 0x8fa   :  { %v2928_v51 = vsub.f32 %v2918_v18, %v2926_v50  ;;  %v2931_v48 = vmul.f32 %v2929_v45, %v2929_v45 }
 0x8fc   :  { %v2935_v52 = vsel %vm210_vm2, %v2931_v48, 0.0  ;;  %v2930_v49 = vmul.f32 %v2928_v51, %v2928_v51 }
 0x8fd   :  { %2936 = vadd.xlane.f32.xlu0 %v2935_v52 }
 0x8fe   :  { %v2932_v53 = vsel %vm210_vm2, %v2930_v49, 0.0 }
 0x8ff   :  { %2933 = vadd.xlane.f32.xlu1 %v2932_v53 }
 0x986   :  { %v2937_v63 = vpop.xlane.xlu0 %2936 }
 0x987   :  { %v2939_v1 = vmul.f32 0.03125, %v2937_v63 }
 0x988   :  { %v2934_v0 = vpop.xlane.xlu1 %2933 }
 0x989   :  { %v2938_v2 = vmul.f32 0.03125, %v2934_v0  ;;  %v2941_v4 = vadd.f32 1e-05, %v2939_v1 }
 0x98b   :  { %v2940_v3 = vadd.f32 1e-05, %v2938_v2 }
 0x98d   :  { %7527 = vrsqrt.f32 %v2940_v3 }
 0x98e   :  { %7529 = vrsqrt.f32 %v2941_v4 }
 0x99a   :  { %v7528_v10 = vpop.eup %7527 }
 0x99b   :  { %v2944_v12 = vmul.f32 %v7528_v10, %v2928_v51  ;;  %v7530_v16 = vpop.eup %7529 }
 0x99c   :  { %v2945_v22 = vmul.f32 %v7530_v16, %v2929_v45 }
 0x99d   :  { %v2950_v14 = vmul.f32 %v2949_v13, %v2944_v12 }
 0x99e   :  { %v2951_v25 = vmul.f32 %v2949_v13, %v2945_v22 }
 0x99f   :  { %v8185_v19 = vadd.f32 %v2955_v15, %v2950_v14 }
 0x9a0   :  { %v8213_v26 = vadd.f32 %v2955_v15, %v2951_v25 }
 0x9a1   :  { %7169 = vmatmul.mubr.msk.f32.vlgmr.msra.gmra.mxu1 %vm210_vm2, %v8185_v19  ;;  %7191 = vmatmul.mubr.msk.f32.vlgmr.msra.gmra.mxu0 %vm210_vm2, %v8185_v19 }
 0x9a2   :  { %7172 = vmatpush3.msra.mxu1 %v6544_v21  ;;  %7205 = vmatpush3.msra.mxu0 %v6540_v56 }
 0x9a3   :  { %7173 = vmatprep.subr.mxu1 %v7597_v5  ;;  %7206 = vmatprep.subr.mxu0 %v7597_v5 }
 0x9a4   :  { %7174 = vmatpush3.msra.mxu1 %v6543_v23  ;;  %7207 = vmatpush3.msra.mxu0 %v6539_v58 }
 0x9a5   :  { %7175 = vmatprep.subr.mxu1 %v7597_v5  ;;  %7208 = vmatprep.subr.mxu0 %v7597_v5 }
 0x9a6   :  { %7176 = vmatpush3.msra.mxu1 %v6542_v20  ;;  %7209 = vmatpush3.msra.mxu0 %v6538_v59 }
 0x9a7   :  { %7177 = vmatprep.subr.mxu1 %v7597_v5  ;;  %7210 = vmatprep.subr.mxu0 %v7597_v5 }
 0x9a8   :  { %7178 = vmatpush3.msra.mxu1 %v6541_v24  ;;  %7179 = vmatprep.mubr.msk.f32.mxu1 %vm7598_vm1, %v7597_v5 }
 0x9a9   :  { %7211 = vmatpush3.msra.mxu0 %v6537_v61  ;;  %7212 = vmatprep.mubr.msk.f32.mxu0 %vm7598_vm1, %v7597_v5 }
 0x9aa   :  { %7180 = vmatmul.mubr.msk.f32.vlgmr.msra.gmra.mxu1 %vm210_vm2, %v8185_v19  ;;  %7193 = vmatprep.subr.mxu1 %v7597_v5 }
 0x9ab   :  { %7213 = vmatmul.mubr.msk.f32.vlgmr.msra.gmra.mxu0 %vm210_vm2, %v8213_v26  ;;  %7226 = vmatprep.subr.mxu0 %v7597_v5 }
 0x9ac   :  { %7194 = vmatpush3.msra.mxu1 %v6552_v27  ;;  %7227 = vmatpush3.msra.mxu0 %v8139_v57 }
 0x9ad   :  { %7195 = vmatprep.subr.mxu1 %v7597_v5  ;;  %7228 = vmatprep.subr.mxu0 %v7597_v5 }
 0x9ae   :  { %7196 = vmatpush3.msra.mxu1 %v6551_v28  ;;  %7229 = vmatpush3.msra.mxu0 %v8150_v29 }
 0x9af   :  { %7197 = vmatprep.subr.mxu1 %v7597_v5  ;;  %7230 = vmatprep.subr.mxu0 %v7597_v5 }
 0x9b0   :  { %7198 = vmatpush3.msra.mxu1 %v6550_v55  ;;  %7231 = vmatpush3.msra.mxu0 %v8159_v60 }
 0x9b1   :  { %7199 = vmatprep.subr.mxu1 %v7597_v5  ;;  %7232 = vmatprep.subr.mxu0 %v7597_v5 }
 0x9b2   :  { %7200 = vmatpush3.msra.mxu1 %v6549_v54  ;;  %7201 = vmatprep.mubr.msk.f32.mxu1 %vm7598_vm1, %v7597_v5 }
 0x9b3   :  { %7233 = vmatpush3.msra.mxu0 %v8169_v62  ;;  %7234 = vmatprep.mubr.msk.f32.mxu0 %vm7598_vm1, %v7597_v5 }
 0x9b4   :  { %7202 = vmatmul.mubr.msk.f32.vlgmr.msra.gmra.mxu1 %vm210_vm2, %v8185_v19  ;;  %7215 = vmatprep.subr.mxu1 %v7597_v5 }
 0x9b5   :  { %7235 = vmatmul.mubr.msk.f32.vlgmr.msra.gmra.mxu0 %vm210_vm2, %v8213_v26  ;;  %7216 = vmatpush3.msra.mxu1 %v6544_v21 }
 0x9b6   :  { %7217 = vmatprep.subr.mxu1 %v7597_v5  ;;  %7223 = vmatprep.mubr.msk.f32.mxu1 %vm7598_vm1, %v7597_v5 }
 0x9b7   :  { %7218 = vmatpush3.msra.mxu1 %v6543_v23  ;;  %7248 = vmatprep.subr.mxu0 %v7597_v5 }
 0x9b8   :  { %7219 = vmatprep.subr.mxu1 %v7597_v5  ;;  %7250 = vmatprep.mubr.msk.f32.mxu0 %vm7598_vm1, %v7597_v5 }
 0x9b9   :  { %7220 = vmatpush3.msra.mxu1 %v6542_v20 }
 0x9ba   :  { %7221 = vmatprep.subr.mxu1 %v7597_v5 }
 0x9bb   :  { %7222 = vmatpush3.msra.mxu1 %v6541_v24 }
 0x9bc   :  { %7224 = vmatmul.mubr.msk.f32.vlgmr.msra.gmra.mxu1 %vm210_vm2, %v8213_v26  ;;  %7237 = vmatprep.subr.mxu1 %v7597_v5 }
 0x9bd   :  { %7238 = vmatpush3.msra.mxu1 %v6552_v27  ;;  %7245 = vmatprep.mubr.msk.f32.mxu1 %vm7598_vm1, %v7597_v5 }
 0x9be   :  { %7239 = vmatprep.subr.mxu1 %v7597_v5 }
 0x9bf   :  { %7240 = vmatpush3.msra.mxu1 %v6551_v28 }
 0x9c0   :  { %7241 = vmatprep.subr.mxu1 %v7597_v5 }
 0x9c1   :  { %7242 = vmatpush3.msra.mxu1 %v6550_v55 }
 0x9c2   :  { %7243 = vmatprep.subr.mxu1 %v7597_v5 }
 0x9c3   :  { %7244 = vmatpush3.msra.mxu1 %v6549_v54 }
 0x9c4   :  { %7246 = vmatmul.mubr.msk.f32.vlgmr.msra.gmra.mxu1 %vm210_vm2, %v8213_v26  ;;  %7258 = vmatprep.subr.mxu1 %v7597_v5 }
 0x9c5   :  { %7260 = vmatprep.mubr.msk.f32.mxu1 %vm7598_vm1, %v7597_v5 }
 0xa61   :  { %v3096_v31 = vpop.f32.mrf.mxu1  ;;  %v3236_v32 = vpop.f32.mrf.mxu0 }
 0xa62   :  { %v8276_v34 = vadd.f32 %v6575_v30, %v3096_v31  ;;  %v8283_v40 = vadd.f32 %v6577_v35, %v3236_v32 }
 0xa63   :  { %v7170_v38 = vpop.f32.mrf.mxu1  ;;  %v7192_v39 = vpop.f32.mrf.mxu0 }
 0xa64   :  { %3594 = vrot.lane.b32.xlu1 %v8276_v34, %s7599_s30 }
 0xa68   :  { %3748 = vrot.lane.b32.xlu1 %v8283_v40, %s7599_s30 }
 0xa6a   :  { %v3166_v43 = vpop.f32.mrf.mxu1 }
 0xa6b   :  { %v3379_v33 = vpop.f32.mrf.mxu0  ;;  %v8290_v44 = vadd.f32 %v6576_v42, %v3166_v43 }
 0xa6c   :  { %v7181_v18 = vpop.f32.mrf.mxu1  ;;  %v8294_v46 = vadd.f32 %v6575_v30, %v3379_v33 }
 0xa6d   :  { %v7214_v41 = vpop.f32.mrf.mxu0  ;;  %3671 = vrot.lane.b32.xlu0 %v8290_v44, %s7599_s30 }
 0xa71   :  { %3902 = vrot.lane.b32.xlu0 %v8294_v46, %s7599_s30 }
 0xa74   :  { %v3306_v47 = vpop.f32.mrf.mxu1 }
 0xa75   :  { %v8301_v45 = vadd.f32 %v6578_v37, %v3306_v47  ;;  %v3519_v50 = vpop.f32.mrf.mxu0 }
 0xa76   :  { %v8303_v51 = vadd.f32 %v6577_v35, %v3519_v50  ;;  %v7203_v48 = vpop.f32.mrf.mxu1 }
 0xa77   :  { %v7236_v52 = vpop.f32.mrf.mxu0  ;;  %3825 = vrot.lane.b32.xlu1 %v8301_v45, %s7599_s30 }
 0xa78   :  { %4056 = vrot.lane.b32.xlu0 %v8303_v51, %s7599_s30 }
 0xa7c   :  { %v3449_v49 = vpop.f32.mrf.mxu1 }
 0xa7d   :  { %v8309_v53 = vadd.f32 %v6576_v42, %v3449_v49 }
 0xa7e   :  { %v7225_v56 = vpop.f32.mrf.mxu1 }
 0xa7f   :  { %3979 = vrot.lane.b32.xlu1 %v8309_v53, %s7599_s30 }
 0xa84   :  { %v3589_v57 = vpop.f32.mrf.mxu1 }
 0xa85   :  { %v8313_v58 = vadd.f32 %v6578_v37, %v3589_v57 }
 0xa86   :  { %v7247_v29 = vpop.f32.mrf.mxu1 }
 0xa87   :  { %4133 = vrot.lane.b32.xlu1 %v8313_v58, %s7599_s30 }
 0xad6   :  { %v3595_v59 = vpop.permute.xlu1 %3594 }
 0xad7   :  { %7249 = vmatpush3.xpose.msk.msra.mxu0 %vm780_vm3, %v3595_v59 }
 0xad8   :  { %7253 = vmatprep.subr.mxu0 %v7597_v5 }
 0xada   :  { %7251 = vmatmul.mubr.msk.f32.vlgmr.msra.gmra.mxu0 %vm780_vm3, %v8276_v34  ;;  %v3749_v60 = vpop.permute.xlu1 %3748 }
 0xadb   :  { %7259 = vmatpush3.xpose.msk.msra.mxu1 %vm780_vm3, %v3749_v60  ;;  %7255 = vmatprep.mubr.msk.f32.mxu0 %vm7598_vm1, %v7597_v5 }
 0xadc   :  { %7268 = vmatprep.subr.mxu1 %v7597_v5 }
 0xade   :  { %7261 = vmatmul.mubr.msk.f32.vlgmr.msra.gmra.mxu1 %vm780_vm3, %v8283_v40 }
 0xadf   :  { %v3672_v61 = vpop.permute.xlu0 %3671  ;;  %7270 = vmatprep.mubr.msk.f32.mxu1 %vm7598_vm1, %v7597_v5 }
 0xae0   :  { %7254 = vmatpush3.xpose.msk.msra.mxu0 %vm780_vm3, %v3672_v61 }
 0xae1   :  { %7263 = vmatprep.subr.mxu0 %v7597_v5 }
 0xae3   :  { %7256 = vmatmul.mubr.msk.f32.vlgmr.msra.gmra.mxu0 %vm780_vm3, %v8290_v44  ;;  %v3903_v62 = vpop.permute.xlu0 %3902 }
 0xae4   :  { %7269 = vmatpush3.xpose.msk.msra.mxu1 %vm780_vm3, %v3903_v62  ;;  %7265 = vmatprep.mubr.msk.f32.mxu0 %vm7598_vm1, %v7597_v5 }
 0xae5   :  { %7278 = vmatprep.subr.mxu1 %v7597_v5 }
 0xae7   :  { %7271 = vmatmul.mubr.msk.f32.vlgmr.msra.gmra.mxu1 %vm780_vm3, %v8294_v46 }
 0xae8   :  { %7280 = vmatprep.mubr.msk.f32.mxu1 %vm7598_vm1, %v7597_v5 }
 0xae9   :  { %v3826_v63 = vpop.permute.xlu1 %3825 }
 0xaea   :  { %v4057_v0 = vpop.permute.xlu0 %4056  ;;  %7264 = vmatpush3.xpose.msk.msra.mxu0 %vm780_vm3, %v3826_v63 }
 0xaeb   :  { %7279 = vmatpush3.xpose.msk.msra.mxu1 %vm780_vm3, %v4057_v0  ;;  %7273 = vmatprep.subr.mxu0 %v7597_v5 }
 0xaec   :  { %7288 = vmatprep.subr.mxu1 %v7597_v5 }
 0xaed   :  { %7266 = vmatmul.mubr.msk.f32.vlgmr.msra.gmra.mxu0 %vm780_vm3, %v8301_v45 }
 0xaee   :  { %7281 = vmatmul.mubr.msk.f32.vlgmr.msra.gmra.mxu1 %vm780_vm3, %v8303_v51  ;;  %7275 = vmatprep.mubr.msk.f32.mxu0 %vm7598_vm1, %v7597_v5 }
 0xaef   :  { %7290 = vmatprep.mubr.msk.f32.mxu1 %vm7598_vm1, %v7597_v5 }
 0xaf1   :  { %v3980_v1 = vpop.permute.xlu1 %3979 }
 0xaf2   :  { %7274 = vmatpush3.xpose.msk.msra.mxu0 %vm780_vm3, %v3980_v1 }
 0xaf3   :  { %7283 = vmatprep.subr.mxu0 %v7597_v5 }
 0xaf5   :  { %7276 = vmatmul.mubr.msk.f32.vlgmr.msra.gmra.mxu0 %vm780_vm3, %v8309_v53 }
 0xaf6   :  { %7285 = vmatprep.mubr.msk.f32.mxu0 %vm7598_vm1, %v7597_v5 }
 0xaf9   :  { %v4134_v2 = vpop.permute.xlu1 %4133 }
 0xafa   :  { %7284 = vmatpush3.xpose.msk.msra.mxu0 %vm780_vm3, %v4134_v2 }
 0xafb   :  { %7293 = vmatprep.subr.mxu0 %v7597_v5 }
 0xafd   :  { %7286 = vmatmul.mubr.msk.f32.vlgmr.msra.gmra.mxu0 %vm780_vm3, %v8313_v58 }
 0xafe   :  { %7295 = vmatprep.mubr.msk.f32.mxu0 %vm7598_vm1, %v7597_v5 }
 0xb9a   :  { %v3666_v3 = vpop.f32.mrf.mxu0 }
 0xb9b   :  { %v4209_v4 = vmul.f32 0.35355338, %v3666_v3 }
 0xb9c   :  { %v7252_v10 = vpop.f32.mrf.mxu0 }
 0xb9d   :  { %v4217_v12 = vsel %vm780_vm3, %v4209_v4, -inf }
 0xb9e   :  { %4218 = vmax.xlane.f32.xlu0 %v4217_v12  ;;  %v3820_v13 = vpop.f32.mrf.mxu1 }
 0xb9f   :  { %v4211_v14 = vmul.f32 0.35355338, %v3820_v13 }
 0xba0   :  { %v7262_v15 = vpop.f32.mrf.mxu1 }
 0xba1   :  { %v4223_v16 = vsel %vm780_vm3, %v4211_v14, -inf }
 0xba2   :  { %4224 = vmax.xlane.f32.xlu0 %v4223_v16 }
 0xba3   :  { %v3743_v21 = vpop.f32.mrf.mxu0 }
 0xba4   :  { %v4210_v22 = vmul.f32 0.35355338, %v3743_v21 }
 0xba5   :  { %v7257_v23 = vpop.f32.mrf.mxu0 }
 0xba6   :  { %v4220_v20 = vsel %vm780_vm3, %v4210_v22, -inf }
 0xba7   :  { %4221 = vmax.xlane.f32.xlu1 %v4220_v20  ;;  %v3974_v24 = vpop.f32.mrf.mxu1 }
 0xba8   :  { %v4213_v25 = vmul.f32 0.35355338, %v3974_v24 }
 0xba9   :  { %v7272_v27 = vpop.f32.mrf.mxu1 }
 0xbaa   :  { %v4229_v28 = vsel %vm780_vm3, %v4213_v25, -inf }
 0xbab   :  { %4230 = vmax.xlane.f32.xlu1 %v4229_v28 }
 0xbad   :  { %v3897_v55 = vpop.f32.mrf.mxu0 }
 0xbae   :  { %v4212_v54 = vmul.f32 0.35355338, %v3897_v55  ;;  %v4128_v30 = vpop.f32.mrf.mxu1 }
 0xbaf   :  { %v4215_v31 = vmul.f32 0.35355338, %v4128_v30  ;;  %v7267_v32 = vpop.f32.mrf.mxu0 }
 0xbb0   :  { %v7282_v35 = vpop.f32.mrf.mxu1  ;;  %v4226_v38 = vsel %vm780_vm3, %v4212_v54, -inf }
 0xbb1   :  { %4227 = vmax.xlane.f32.xlu0 %v4226_v38  ;;  %v4235_v39 = vsel %vm780_vm3, %v4215_v31, -inf }
 0xbb2   :  { %4236 = vmax.xlane.f32.xlu1 %v4235_v39 }
 0xbb5   :  { %v4051_v42 = vpop.f32.mrf.mxu0 }
 0xbb6   :  { %v4214_v43 = vmul.f32 0.35355338, %v4051_v42 }
 0xbb7   :  { %v7277_v33 = vpop.f32.mrf.mxu0 }
 0xbb8   :  { %v4232_v18 = vsel %vm780_vm3, %v4214_v43, -inf }
 0xbb9   :  { %4233 = vmax.xlane.f32.xlu0 %v4232_v18 }
 0xbbd   :  { %v4205_v41 = vpop.f32.mrf.mxu0 }
 0xbbe   :  { %v4216_v37 = vmul.f32 0.35355338, %v4205_v41 }
 0xbbf   :  { %v7287_v47 = vpop.f32.mrf.mxu0 }
 0xbc0   :  { %v4238_v50 = vsel %vm780_vm3, %v4216_v37, -inf }
 0xbc1   :  { %4239 = vmax.xlane.f32.xlu0 %v4238_v50 }
 0xbc3   :  { %4305 = vrot.lane.b32.xlu1 %v8276_v34, %s7600_s19 }
 0xbc7   :  { %4457 = vrot.lane.b32.xlu1 %v8283_v40, %s7600_s19 }
 0xbcb   :  { %4533 = vrot.lane.b32.xlu1 %v8301_v45, %s7600_s19 }
 0xbcf   :  { %4685 = vrot.lane.b32.xlu1 %v8309_v53, %s7600_s19 }
 0xbd7   :  { %4381 = vrot.lane.b32.xlu0 %v8290_v44, %s7600_s19 }
 0xbdb   :  { %4609 = vrot.lane.b32.xlu0 %v8294_v46, %s7600_s19 }
 0xc27   :  { %v4219_v48 = vpop.xlane.xlu0 %4218 }
 0xc28   :  { %v4241_v52 = vsub.f32 %v4209_v4, %v4219_v48 }
 0xc2a   :  { %v4249_v49 = vmul.f32 1.442695, %v4241_v52 }
 0xc2b   :  { %v4225_v56 = vpop.xlane.xlu0 %4224 }
 0xc2c   :  { %7531 = vpow2.f32 %v4249_v49  ;;  %v4243_v34 = vsub.f32 %v4211_v14, %v4225_v56 }
 0xc2e   :  { %v4253_v57 = vmul.f32 1.442695, %v4243_v34 }
 0xc30   :  { %7533 = vpow2.f32 %v4253_v57  ;;  %v4222_v40 = vpop.xlane.xlu1 %4221 }
 0xc31   :  { %v4242_v29 = vsub.f32 %v4210_v22, %v4222_v40 }
 0xc33   :  { %v4251_v45 = vmul.f32 1.442695, %v4242_v29 }
 0xc34   :  { %v4231_v59 = vpop.xlane.xlu1 %4230 }
 0xc35   :  { %7535 = vpow2.f32 %v4251_v45  ;;  %v4245_v53 = vsub.f32 %v4213_v25, %v4231_v59 }
 0xc37   :  { %v4257_v60 = vmul.f32 1.442695, %v4245_v53 }
 0xc39   :  { %v7532_v61 = vpop.eup %7531  ;;  %7537 = vpow2.f32 %v4257_v60 }
 0xc3a   :  { %v4228_v44 = vpop.xlane.xlu0 %4227  ;;  %v4265_v46 = vsel %vm780_vm3, %v7532_v61, 0.0 }
 0xc3b   :  { %v4244_v62 = vsub.f32 %v4212_v54, %v4228_v44  ;;  %v4237_v63 = vpop.xlane.xlu1 %4236  ;;  %4266 = vadd.xlane.f32.xlu1 %v4265_v46 }
 0xc3c   :  { %v4247_v0 = vsub.f32 %v4215_v31, %v4237_v63 }
 0xc3d   :  { %v7534_v1 = vpop.eup %7533  ;;  %v4255_v2 = vmul.f32 1.442695, %v4244_v62 }
 0xc3e   :  { %v4261_v3 = vmul.f32 1.442695, %v4247_v0  ;;  %v4271_v4 = vsel %vm780_vm3, %v7534_v1, 0.0 }
 0xc3f   :  { %7539 = vpow2.f32 %v4255_v2  ;;  %v4306_v10 = vpop.permute.xlu1 %4305  ;;  %4272 = vadd.xlane.f32.xlu1 %v4271_v4  ;;  %v6558_v2 = vld [vmem:[%s8765_s6 + $0x28] sm:$0xff] }
 0xc40   :  { %7541 = vpow2.f32 %v4261_v3  ;;  %7289 = vmatpush3.msra.mxu1 %v4306_v10  ;;  %v6559_v3 = vld [vmem:[%s8765_s6 + $0x30] sm:$0xff] }
 0xc41   :  { %7298 = vmatprep.subr.mxu1 %v7597_v5 }
 0xc42   :  { %v7536_v12 = vpop.eup %7535  ;;  %v4234_v13 = vpop.xlane.xlu0 %4233 }
 0xc43   :  { %v4246_v14 = vsub.f32 %v4214_v43, %v4234_v13  ;;  %v4268_v15 = vsel %vm780_vm3, %v7536_v12, 0.0  ;;  %v4458_v38 = vpop.permute.xlu1 %4457 }
 0xc44   :  { %4269 = vadd.xlane.f32.xlu0 %v4268_v15 }
 0xc45   :  { %v4259_v16 = vmul.f32 1.442695, %v4246_v14  ;;  %v6560_v14 = vld [vmem:[%s8765_s6 + $0x38] sm:$0xff] }
 0xc46   :  { %v7538_v21 = vpop.eup %7537 }
 0xc47   :  { %7543 = vpow2.f32 %v4259_v16  ;;  %v4277_v22 = vsel %vm780_vm3, %v7538_v21, 0.0  ;;  %v4534_v39 = vpop.permute.xlu1 %4533 }
 0xc48   :  { %4278 = vadd.xlane.f32.xlu1 %v4277_v22 }
 0xc4a   :  { %v4240_v23 = vpop.xlane.xlu0 %4239 }
 0xc4b   :  { %v4248_v20 = vsub.f32 %v4216_v37, %v4240_v23  ;;  %v4686_v42 = vpop.permute.xlu1 %4685 }
 0xc4c   :  { %v7540_v24 = vpop.eup %7539 }
 0xc4d   :  { %v8390_v25 = vpop.eup %7541  ;;  %v4263_v27 = vmul.f32 1.442695, %v4248_v20  ;;  %v4274_v28 = vsel %vm780_vm3, %v7540_v24, 0.0 }
 0xc4e   :  { %4275 = vadd.xlane.f32.xlu0 %v4274_v28  ;;  %v4382_v55 = vpop.permute.xlu0 %4381  ;;  %v4283_v54 = vsel %vm780_vm3, %v8390_v25, 0.0 }
 0xc4f   :  { %7545 = vpow2.f32 %v4263_v27  ;;  %4284 = vadd.xlane.f32.xlu1 %v4283_v54  ;;  %7294 = vmatpush3.msra.mxu0 %v4382_v55 }
 0xc50   :  { %7303 = vmatprep.subr.mxu0 %v7597_v5 }
 0xc52   :  { %v4610_v18 = vpop.permute.xlu0 %4609 }
 0xc54   :  { %v8396_v30 = vpop.eup %7543 }
 0xc55   :  { %v4280_v31 = vsel %vm780_vm3, %v8396_v30, 0.0 }
 0xc56   :  { %4281 = vadd.xlane.f32.xlu0 %v4280_v31 }
 0xc5c   :  { %v8400_v32 = vpop.eup %7545 }
 0xc5d   :  { %v4286_v35 = vsel %vm780_vm3, %v8400_v32, 0.0 }
 0xc5e   :  { %4287 = vadd.xlane.f32.xlu0 %v4286_v35 }
 0xc60   :  { %4837 = vrot.lane.b32.xlu1 %v8313_v58, %s7600_s19 }
 0xc74   :  { %4761 = vrot.lane.b32.xlu0 %v8303_v51, %s7600_s19 }
 0xcc4   :  { %v4267_v43 = vpop.xlane.xlu1 %4266 }
 0xcc5   :  { %7547 = vrcp.f32 %v4267_v43 }
 0xcc8   :  { %v4273_v33 = vpop.xlane.xlu1 %4272 }
 0xcc9   :  { %7549 = vrcp.f32 %v4273_v33 }
 0xccd   :  { %v4270_v41 = vpop.xlane.xlu0 %4269 }
 0xcce   :  { %7551 = vrcp.f32 %v4270_v41 }
 0xcd1   :  { %v4279_v37 = vpop.xlane.xlu1 %4278 }
 0xcd2   :  { %v7548_v47 = vpop.eup %7547  ;;  %7553 = vrcp.f32 %v4279_v37  ;;  %v8484_v37 = vld [vmem:[%s8766_s7 + $0x8] sm:$0x3f] }
 0xcd3   :  { %v4297_v50 = vmul.f32 %v7548_v47, %v7532_v61 }
 0xcd5   :  { %7291 = vmatmul.mubr.msk.f32.vlgmr.msra.gmra.mxu1 %vm780_vm3, %v4297_v50 }
 0xcd6   :  { %v7550_v58 = vpop.eup %7549  ;;  %7299 = vmatpush3.msra.mxu1 %v4458_v38  ;;  %7300 = vmatprep.mubr.msk.f32.mxu1 %vm7598_vm1, %v7597_v5 }
 0xcd7   :  { %v4276_v51 = vpop.xlane.xlu0 %4275  ;;  %7308 = vmatprep.subr.mxu1 %v7597_v5  ;;  %v4299_v48 = vmul.f32 %v7550_v58, %v7534_v1  ;;  %v6557_v1 = vld [vmem:[%s8765_s6 + $0x20] sm:$0xff] }
 0xcd8   :  { %7555 = vrcp.f32 %v4276_v51  ;;  %v4285_v52 = vpop.xlane.xlu1 %4284  ;;  %v5514_v51 = vrot.slane %v8484_v37, %v2698_v17 }
 0xcd9   :  { %7301 = vmatmul.mubr.msk.f32.vlgmr.msra.gmra.mxu1 %vm780_vm3, %v4299_v48  ;;  %7557 = vrcp.f32 %v4285_v52 }
 0xcda   :  { %7309 = vmatpush3.msra.mxu1 %v4610_v18  ;;  %7310 = vmatprep.mubr.msk.f32.mxu1 %vm7598_vm1, %v7597_v5 }
 0xcdb   :  { %v7552_v49 = vpop.eup %7551  ;;  %7318 = vmatprep.subr.mxu1 %v7597_v5 }
 0xcdc   :  { %v4298_v56 = vmul.f32 %v7552_v49, %v7536_v12  ;;  %v4838_v62 = vpop.permute.xlu1 %4837 }
 0xcde   :  { %7296 = vmatmul.mubr.msk.f32.vlgmr.msra.gmra.mxu0 %vm780_vm3, %v4298_v56 }
 0xcdf   :  { %v7554_v34 = vpop.eup %7553  ;;  %v4282_v57 = vpop.xlane.xlu0 %4281  ;;  %7304 = vmatpush3.msra.mxu0 %v4534_v39  ;;  %7305 = vmatprep.mubr.msk.f32.mxu0 %vm7598_vm1, %v7597_v5 }
 0xce0   :  { %7559 = vrcp.f32 %v4282_v57  ;;  %v4301_v40 = vmul.f32 %v7554_v34, %v7538_v21  ;;  %7313 = vmatprep.subr.mxu0 %v7597_v5 }
 0xce2   :  { %7311 = vmatmul.mubr.msk.f32.vlgmr.msra.gmra.mxu1 %vm780_vm3, %v4301_v40 }
 0xce3   :  { %7320 = vmatprep.mubr.msk.f32.mxu1 %vm7598_vm1, %v7597_v5 }
 0xce5   :  { %v7556_v29 = vpop.eup %7555 }
 0xce6   :  { %v4300_v45 = vmul.f32 %v7556_v29, %v7540_v24  ;;  %v7558_v53 = vpop.eup %7557 }
 0xce7   :  { %v4288_v59 = vpop.xlane.xlu0 %4287  ;;  %v4303_v61 = vmul.f32 %v7558_v53, %v8390_v25 }
 0xce8   :  { %7561 = vrcp.f32 %v4288_v59  ;;  %7306 = vmatmul.mubr.msk.f32.vlgmr.msra.gmra.mxu0 %vm780_vm3, %v4300_v45 }
 0xce9   :  { %7314 = vmatpush3.msra.mxu0 %v4686_v42  ;;  %7315 = vmatprep.mubr.msk.f32.mxu0 %vm7598_vm1, %v7597_v5 }
 0xcea   :  { %7323 = vmatprep.subr.mxu0 %v7597_v5 }
 0xceb   :  { %v4762_v60 = vpop.permute.xlu0 %4761 }
 0xcec   :  { %7319 = vmatpush3.msra.mxu1 %v4762_v60 }
 0xced   :  { %v7560_v44 = vpop.eup %7559  ;;  %7321 = vmatmul.mubr.msk.f32.vlgmr.msra.gmra.mxu1 %vm780_vm3, %v4303_v61  ;;  %7328 = vmatprep.subr.mxu1 %v7597_v5 }
 0xcee   :  { %v4302_v46 = vmul.f32 %v7560_v44, %v8396_v30  ;;  %7330 = vmatprep.mubr.msk.f32.mxu1 %vm7598_vm1, %v7597_v5  ;;  %7329 = vmatpush3.msra.mxu1 %v6557_v1 }
 0xcef   :  { %7338 = vmatprep.subr.mxu1 %v7597_v5 }
 0xcf0   :  { %7316 = vmatmul.mubr.msk.f32.vlgmr.msra.gmra.mxu0 %vm780_vm3, %v4302_v46 }
 0xcf1   :  { %7324 = vmatpush3.msra.mxu0 %v4838_v62  ;;  %7325 = vmatprep.mubr.msk.f32.mxu0 %vm7598_vm1, %v7597_v5 }
 0xcf2   :  { %7333 = vmatprep.subr.mxu0 %v7597_v5 }
 0xcf5   :  { %v7562_v63 = vpop.eup %7561 }
 0xcf6   :  { %v4304_v0 = vmul.f32 %v7562_v63, %v8400_v32 }
 0xcf8   :  { %7326 = vmatmul.mubr.msk.f32.vlgmr.msra.gmra.mxu0 %vm780_vm3, %v4304_v0 }
 0xcf9   :  { %7335 = vmatprep.mubr.msk.f32.mxu0 %vm7598_vm1, %v7597_v5  ;;  %7334 = vmatpush3.msra.mxu0 %v6558_v2 }
 0xcfa   :  { %7343 = vmatprep.subr.mxu0 %v7597_v5 }
 0xd95   :  { %v4377_v4 = vpop.f32.mrf.mxu1 }
 0xd96   :  { %7331 = vmatmul.mubr.msk.f32.vlgmr.msra.gmra.mxu1 %vm780_vm3, %v4377_v4 }
 0xd97   :  { %v7292_v10 = vpop.f32.mrf.mxu1  ;;  %7339 = vmatpush3.msra.mxu1 %v6559_v3  ;;  %7340 = vmatprep.mubr.msk.f32.mxu1 %vm7598_vm1, %v7597_v5 }
 0xd98   :  { %7348 = vmatprep.subr.mxu1 %v7597_v5 }
 0xd99   :  { %v4529_v12 = vpop.f32.mrf.mxu1 }
 0xd9a   :  { %7341 = vmatmul.mubr.msk.f32.vlgmr.msra.gmra.mxu1 %vm780_vm3, %v4529_v12 }
 0xd9b   :  { %v7302_v13 = vpop.f32.mrf.mxu1  ;;  %7349 = vmatpush3.msra.mxu1 %v6557_v1  ;;  %7350 = vmatprep.mubr.msk.f32.mxu1 %vm7598_vm1, %v7597_v5 }
 0xd9c   :  { %7358 = vmatprep.subr.mxu1 %v7597_v5 }
 0xd9e   :  { %v4453_v15 = vpop.f32.mrf.mxu0 }
 0xd9f   :  { %7336 = vmatmul.mubr.msk.f32.vlgmr.msra.gmra.mxu0 %vm780_vm3, %v4453_v15 }
 0xda0   :  { %v7297_v16 = vpop.f32.mrf.mxu0  ;;  %7344 = vmatpush3.msra.mxu0 %v6560_v14  ;;  %7345 = vmatprep.mubr.msk.f32.mxu0 %vm7598_vm1, %v7597_v5 }
 0xda1   :  { %7353 = vmatprep.subr.mxu0 %v7597_v5 }
 0xda2   :  { %v4681_v21 = vpop.f32.mrf.mxu1 }
 0xda3   :  { %7351 = vmatmul.mubr.msk.f32.vlgmr.msra.gmra.mxu1 %vm780_vm3, %v4681_v21 }
 0xda4   :  { %v7312_v22 = vpop.f32.mrf.mxu1  ;;  %7359 = vmatpush3.msra.mxu1 %v6559_v3  ;;  %7360 = vmatprep.mubr.msk.f32.mxu1 %vm7598_vm1, %v7597_v5 }
 0xda8   :  { %v4605_v23 = vpop.f32.mrf.mxu0 }
 0xda9   :  { %7346 = vmatmul.mubr.msk.f32.vlgmr.msra.gmra.mxu0 %vm780_vm3, %v4605_v23  ;;  %v6564_v23 = vld [vmem:[%s8767_s8 + $0x30] sm:$0xff] }
 0xdaa   :  { %v7307_v20 = vpop.f32.mrf.mxu0  ;;  %7354 = vmatpush3.msra.mxu0 %v6558_v2  ;;  %7355 = vmatprep.mubr.msk.f32.mxu0 %vm7598_vm1, %v7597_v5 }
 0xdab   :  { %7363 = vmatprep.subr.mxu0 %v7597_v5  ;;  %v6563_v20 = vld [vmem:[%s8767_s8 + $0x28] sm:$0xff] }
 0xdad   :  { %v4833_v24 = vpop.f32.mrf.mxu1 }
 0xdae   :  { %7361 = vmatmul.mubr.msk.f32.vlgmr.msra.gmra.mxu1 %vm780_vm3, %v4833_v24  ;;  %v6562_v24 = vld [vmem:[%s8767_s8 + $0x20] sm:$0xff] }
 0xdaf   :  { %v7322_v25 = vpop.f32.mrf.mxu1 }
 0xdb0   :  { %v4757_v27 = vpop.f32.mrf.mxu0  ;;  %v6574_v25 = vld [vmem:[%s8769_s10 + $0x78] sm:$0xff] }
 0xdb1   :  { %7356 = vmatmul.mubr.msk.f32.vlgmr.msra.gmra.mxu0 %vm780_vm3, %v4757_v27  ;;  %v6573_v27 = vld [vmem:[%s8769_s10 + $0x70] sm:$0xff] }
 0xdb2   :  { %v7317_v28 = vpop.f32.mrf.mxu0  ;;  %7364 = vmatpush3.msra.mxu0 %v6560_v14  ;;  %7365 = vmatprep.mubr.msk.f32.mxu0 %vm7598_vm1, %v7597_v5 }
 0xdb3   :  { %7379 = vmatprep.subr.mxu0 %v6574_v25  ;;  %v6572_v28 = vld [vmem:[%s8769_s10 + $0x68] sm:$0xff] }
 0xdb8   :  { %v4909_v55 = vpop.f32.mrf.mxu0 }
 0xdb9   :  { %7366 = vmatmul.mubr.msk.f32.vlgmr.msra.gmra.mxu0 %vm780_vm3, %v4909_v55  ;;  %v6571_v55 = vld [vmem:[%s8769_s10 + $0x60] sm:$0xff] }
 0xdba   :  { %v7327_v54 = vpop.f32.mrf.mxu0  ;;  %7380 = vmatpush3.msra.mxu0 %v6574_v25  ;;  %v5768_v25 = vrot.slane %v8484_v37, %v2954_v9 }
 0xdbb   :  { %7381 = vmatprep.subr.mxu0 %v6573_v27 }
 0xdbc   :  { %7382 = vmatpush3.msra.mxu0 %v6573_v27 }
 0xdbd   :  { %7383 = vmatprep.subr.mxu0 %v6572_v28 }
 0xdbe   :  { %7384 = vmatpush3.msra.mxu0 %v6572_v28 }
 0xdbf   :  { %7385 = vmatprep.subr.mxu0 %v6571_v55 }
 0xdc0   :  { %7386 = vmatpush3.msra.mxu0 %v6571_v55 }
 0xe56   :  { %v4982_v30 = vpop.f32.mrf.mxu1 }
 0xe57   :  { %v5497_v33 = vsel %vm210_vm2, %v4982_v30, 0.0 }
 0xe58   :  { %v7332_v31 = vpop.f32.mrf.mxu1 }
 0xe5a   :  { %v5128_v32 = vpop.f32.mrf.mxu1 }
 0xe5b   :  { %v5500_v47 = vsel %vm210_vm2, %v5128_v32, 0.0 }
 0xe5c   :  { %v7342_v35 = vpop.f32.mrf.mxu1 }
 0xe5f   :  { %v5055_v38 = vpop.f32.mrf.mxu0 }
 0xe60   :  { %v5498_v42 = vsel %vm210_vm2, %v5055_v38, 0.0  ;;  %v5548_v38 = vrot.slane %v8484_v37, %v2733_v6  ;;  %v6570_v6 = vld [vmem:[%s8769_s10 + $0x58] sm:$0xff] }
 0xe61   :  { %v7337_v39 = vpop.f32.mrf.mxu0  ;;  %v5499_v18 = vadd.f32 %v5498_v42, %v5497_v33  ;;  %v5554_v33 = vrot.slane %v8484_v37, %v2739_v7  ;;  %7387 = vmatprep.subr.mxu0 %v6570_v6  ;;  %v6569_v7 = vld [vmem:[%s8769_s10 + $0x50] sm:$0xff] }
 0xe62   :  { %7388 = vmatpush3.msra.mxu0 %v6570_v6  ;;  %v6633_v6 = vld [vmem:[%s8772_s13 + $0x48] sm:$0xff] }
 0xe63   :  { %v5274_v43 = vpop.f32.mrf.mxu1  ;;  %v5501_v58 = vadd.f32 %v5500_v47, %v5499_v18  ;;  %7389 = vmatprep.subr.mxu0 %v6569_v7 }
 0xe64   :  { %v5504_v60 = vsel %vm210_vm2, %v5274_v43, 0.0  ;;  %7390 = vmatpush3.msra.mxu0 %v6569_v7  ;;  %v6626_v7 = vld [vmem:[%s8772_s13 + $0x20] sm:$0xff] }
 0xe65   :  { %v7352_v41 = vpop.f32.mrf.mxu1 }
 0xe69   :  { %v5201_v50 = vpop.f32.mrf.mxu0 }
 0xe6a   :  { %v5502_v48 = vsel %vm210_vm2, %v5201_v50, 0.0 }
 0xe6b   :  { %v5503_v52 = vadd.f32 %v5502_v48, %v5501_v58  ;;  %v7347_v49 = vpop.f32.mrf.mxu0  ;;  %v6568_v48 = vld [vmem:[%s8769_s10 + $0x48] sm:$0xff] }
 0xe6c   :  { %7391 = vmatprep.subr.mxu0 %v6568_v48  ;;  %v6619_v49 = vld [vmem:[%s8768_s9 + $0x1] ss:$0 sm:$0xff] }
 0xe6d   :  { %v5515_v56 = vadd.f32 %v5514_v51, %v5503_v52  ;;  %v6567_v52 = vld [vmem:[%s8769_s10 + $0x40] sm:$0xff]  ;;  %7392 = vmatpush3.msra.mxu0 %v6568_v48 }
 0xe6e   :  { %v5420_v34 = vpop.f32.mrf.mxu1  ;;  %7393 = vmatprep.subr.mxu0 %v6567_v52  ;;  %v6632_v48 = vld [vmem:[%s8772_s13 + $0x40] sm:$0xff] }
 0xe6f   :  { %v5517_v57 = vadd.f32 %v5515_v56, %v8185_v19  ;;  %v5507_v17 = vsel %vm210_vm2, %v5420_v34, 0.0  ;;  %7394 = vmatpush3.msra.mxu0 %v6567_v52 }
 0xe70   :  { %v7362_v40 = vpop.f32.mrf.mxu1  ;;  %7420 = vmatprep.subr.mxu0 %v7597_v5 }
 0xe71   :  { %v5347_v29 = vpop.f32.mrf.mxu0  ;;  %v5519_v45 = vsel %vm210_vm2, %v5517_v57, 0.0 }
 0xe72   :  { %v5505_v59 = vsel %vm210_vm2, %v5347_v29, 0.0  ;;  %5520 = vadd.xlane.f32.xlu0 %v5519_v45 }
 0xe73   :  { %v7357_v53 = vpop.f32.mrf.mxu0  ;;  %v5506_v61 = vadd.f32 %v5505_v59, %v5504_v60  ;;  %v5649_v59 = vrot.slane %v8484_v37, %v2834_v36 }
 0xe75   :  { %v5508_v46 = vadd.f32 %v5507_v17, %v5506_v61 }
 0xe79   :  { %v5493_v44 = vpop.f32.mrf.mxu0 }
 0xe7a   :  { %v5509_v62 = vsel %vm210_vm2, %v5493_v44, 0.0 }
 0xe7b   :  { %v5510_v63 = vadd.f32 %v5509_v62, %v5508_v46  ;;  %v7367_v0 = vpop.f32.mrf.mxu0 }
 0xe7d   :  { %v5516_v19 = vadd.f32 %v5514_v51, %v5510_v63 }
 0xe7f   :  { %v5518_v1 = vadd.f32 %v5516_v19, %v8213_v26  ;;  %v6565_v26 = vld [vmem:[%s8767_s8 + $0x38] sm:$0xff]  ;;  %s6477_s8 = sshll.u32 %s7601_s5, 4  ;;  %s6478_s8 = int_to_ptr.vmem [resolvable:$true] %s6477_s8 }
 0xe80   :  { %7368 = vmatprep.subr.mxu1 %v6565_v26  ;;  %s7575_s30 = scalar_lea.vmem %s6478_s8, 32  ;;  %p7580_p1 = scmp.lt.s32.totalorder %s6478_s8, %s6478_s8 }
 0xe81   :  { %v5522_v2 = vsel %vm210_vm2, %v5518_v1, 0.0  ;;  %7369 = vmatpush3.msra.mxu1 %v6565_v26  ;;  %p7576_p0 = scmp.ne.s32.totalorder %s6478_s8, %s7575_s30  ;;  %p7581_p2 = scmp.lt.s32.totalorder %s7575_s30, %s7575_s30 }
 0xe82   :  { %5523 = vadd.xlane.f32.xlu1 %v5522_v2  ;;  %7370 = vmatprep.subr.mxu1 %v6564_v23 }
 0xe83   :  { %7371 = vmatpush3.msra.mxu1 %v6564_v23  ;;  %v5762_v23 = vrot.slane %v8484_v37, %v2948_v8  ;;  %p7582_p3 = por %p7581_p2, %p7580_p1 }
 0xe84   :  { %7372 = vmatprep.subr.mxu1 %v6563_v20 }
 0xe85   :  { %7373 = vmatpush3.msra.mxu1 %v6563_v20  ;;  %p7583_p4 = pnand %p7582_p3, %p7576_p0 }
 0xe86   :  { %7374 = vmatprep.subr.mxu1 %v6562_v24 }
 0xe87   :  { %7375 = vmatpush3.msra.mxu1 %v6562_v24 }
 0xe88   :  { %7398 = vmatprep.subr.mxu1 %v7597_v5 }
 0xefb   :  { %v5521_v3 = vpop.xlane.xlu0 %5520 }
 0xefc   :  { %v5525_v4 = vmul.f32 0.03125, %v5521_v3 }
 0xefe   :  { %v5527_v10 = vsub.f32 %v5517_v57, %v5525_v4 }
 0xf00   :  { %v5529_v12 = vmul.f32 %v5527_v10, %v5527_v10 }
 0xf02   :  { %v5531_v13 = vsel %vm210_vm2, %v5529_v12, 0.0 }
 0xf03   :  { %5532 = vadd.xlane.f32.xlu0 %v5531_v13 }
 0xf0b   :  { %v5524_v14 = vpop.xlane.xlu1 %5523 }
 0xf0c   :  { %v5526_v15 = vmul.f32 0.03125, %v5524_v14 }
 0xf0e   :  { %v5528_v16 = vsub.f32 %v5518_v1, %v5526_v15 }
 0xf10   :  { %v5530_v21 = vmul.f32 %v5528_v16, %v5528_v16 }
 0xf12   :  { %v5534_v22 = vsel %vm210_vm2, %v5530_v21, 0.0 }
 0xf13   :  { %5535 = vadd.xlane.f32.xlu0 %v5534_v22 }
 0xf8c   :  { %v5533_v54 = vpop.xlane.xlu0 %5532 }
 0xf8d   :  { %v5537_v30 = vmul.f32 0.03125, %v5533_v54 }
 0xf8f   :  { %v5539_v31 = vadd.f32 1e-05, %v5537_v30 }
 0xf91   :  { %7563 = vrsqrt.f32 %v5539_v31 }
 0xf9c   :  { %v5536_v32 = vpop.xlane.xlu0 %5535 }
 0xf9d   :  { %v5538_v35 = vmul.f32 0.03125, %v5536_v32 }
 0xf9e   :  { %v7564_v39 = vpop.eup %7563 }
 0xf9f   :  { %v5540_v42 = vadd.f32 1e-05, %v5538_v35  ;;  %v5543_v43 = vmul.f32 %v7564_v39, %v5527_v10 }
 0xfa1   :  { %7565 = vrsqrt.f32 %v5540_v42  ;;  %v5549_v18 = vmul.f32 %v5548_v38, %v5543_v43 }
 0xfa3   :  { %v5555_v41 = vadd.f32 %v5554_v33, %v5549_v18 }
 0xfa5   :  { %7376 = vmatprep.mubr.msk.f32.mxu1 %vm210_vm2, %v5555_v41 }
 0xfae   :  { %v7566_v47 = vpop.eup %7565 }
 0xfaf   :  { %v5544_v50 = vmul.f32 %v7566_v47, %v5528_v16  ;;  %v6635_v47 = vld [vmem:[%s8772_s13 + $0x58] sm:$0xff] }
 0xfb1   :  { %v5550_v58 = vmul.f32 %v5548_v38, %v5544_v50  ;;  %v6628_v50 = vld [vmem:[%s8772_s13 + $0x30] sm:$0xff] }
 0xfb3   :  { %v5556_v51 = vadd.f32 %v5554_v33, %v5550_v58  ;;  %v6634_v58 = vld [vmem:[%s8772_s13 + $0x50] sm:$0xff] }
 0xfb5   :  { %7377 = vmatmul.mubr.msk.f32.vlgmr.msra.gmra.mxu1 %vm210_vm2, %v5556_v51 }
 0xfb6   :  { %7406 = vmatprep.mubr.msk.f32.mxu1 %vm7598_vm1, %v7597_v5 }
0x1075   :  { %v7378_v56 = vpop.f32.mrf.mxu1 }
0x1076   :  { %v5641_v34 = vadd.f32 %v7378_v56, %v6619_v49 }
0x1077   :  { %v5635_v57 = vpop.f32.mrf.mxu1 }
0x1078   :  { %v5636_v40 = vadd.f32 %v6619_v49, %v5635_v57  ;;  %v5645_v45 = vmax.f32 %v5641_v34, 0.0 }
0x107a   :  { %v5644_v29 = vmax.f32 %v5636_v40, 0.0 }
0x107c   :  { %7395 = vmatprep.mubr.msk.f32.mxu0 %vm2836_vm4, %v5644_v29 }
0x107d   :  { %7396 = vmatmul.mubr.msk.f32.vlgmr.msra.gmra.mxu0 %vm2836_vm4, %v5645_v45  ;;  %v6624_v45 = vld [vmem:[%s8770_s11] ss:$0 sm:$0xff] }
0x107e   :  { %7428 = vmatprep.mubr.msk.f32.mxu0 %vm7598_vm1, %v7597_v5  ;;  %7421 = vmatpush3.msra.mxu0 %v6635_v47  ;;  %v6659_v47 = vld [vmem:[%s8772_s13 + $0xf0] sm:$0xff] }
0x107f   :  { %7422 = vmatprep.subr.mxu0 %v7597_v5 }
0x1080   :  { %7423 = vmatpush3.msra.mxu0 %v6634_v58 }
0x1081   :  { %7424 = vmatprep.subr.mxu0 %v7597_v5 }
0x1082   :  { %7425 = vmatpush3.msra.mxu0 %v6633_v6 }
0x1083   :  { %7426 = vmatprep.subr.mxu0 %v7597_v5 }
0x1084   :  { %7427 = vmatpush3.msra.mxu0 %v6632_v48 }
0x1085   :  { %7442 = vmatprep.subr.mxu0 %v7597_v5 }
0x113d   :  { %v7397_v53 = vpop.f32.mrf.mxu0 }
0x113e   :  { %v5728_v60 = vadd.f32 %v7397_v53, %v5649_v59 }
0x113f   :  { %v5722_v61 = vpop.f32.mrf.mxu0 }
0x1140   :  { %v5723_v17 = vadd.f32 %v5722_v61, %v5649_v59  ;;  %v5732_v44 = vadd.f32 %v5728_v60, %v5556_v51  ;;  %v6627_v51 = vld [vmem:[%s8772_s13 + $0x28] sm:$0xff]  ;;  %v6625_v60 = vld [vmem:[%s8771_s12] ss:$0 sm:$0xff] }
0x1142   :  { %v5736_v46 = vsel %vm210_vm2, %v5732_v44, 0.0  ;;  %v5731_v62 = vadd.f32 %v5723_v17, %v5555_v41  ;;  %v6629_v41 = vld [vmem:[%s8772_s13 + $0x38] sm:$0xff] }
0x1143   :  { %5737 = vadd.xlane.f32.xlu0 %v5736_v46  ;;  %7399 = vmatpush3.msra.mxu1 %v6629_v41 }
0x1144   :  { %v5733_v63 = vsel %vm210_vm2, %v5731_v62, 0.0  ;;  %7400 = vmatprep.subr.mxu1 %v7597_v5 }
0x1145   :  { %5734 = vadd.xlane.f32.xlu1 %v5733_v63  ;;  %7401 = vmatpush3.msra.mxu1 %v6628_v50  ;;  %v6658_v50 = vld [vmem:[%s8772_s13 + $0xe8] sm:$0xff] }
0x1146   :  { %7402 = vmatprep.subr.mxu1 %v7597_v5 }
0x1147   :  { %7403 = vmatpush3.msra.mxu1 %v6627_v51  ;;  %v6657_v51 = vld [vmem:[%s8772_s13 + $0xe0] sm:$0xff] }
0x1148   :  { %7404 = vmatprep.subr.mxu1 %v7597_v5 }
0x1149   :  { %7405 = vmatpush3.msra.mxu1 %v6626_v7 }
0x114a   :  { %7409 = vmatprep.subr.mxu1 %v7597_v5 }
0x11cc   :  { %v5738_v0 = vpop.xlane.xlu0 %5737 }
0x11cd   :  { %v5740_v19 = vmul.f32 0.03125, %v5738_v0 }
0x11ce   :  { %v5735_v1 = vpop.xlane.xlu1 %5734 }
0x11cf   :  { %v5742_v2 = vsub.f32 %v5732_v44, %v5740_v19  ;;  %v5739_v3 = vmul.f32 0.03125, %v5735_v1  ;;  %v5818_v1 = vld [vmem:[%s8772_s13 + $0x18] sm:$0xff] }
0x11d1   :  { %v5741_v4 = vsub.f32 %v5731_v62, %v5739_v3  ;;  %v5744_v10 = vmul.f32 %v5742_v2, %v5742_v2 }
0x11d3   :  { %v5748_v36 = vsel %vm210_vm2, %v5744_v10, 0.0  ;;  %v5743_v12 = vmul.f32 %v5741_v4, %v5741_v4  ;;  %v5817_v10 = vld [vmem:[%s8772_s13 + $0x10] sm:$0xff] }
0x11d4   :  { %5749 = vadd.xlane.f32.xlu0 %v5748_v36  ;;  %v6644_v36 = vld [vmem:[%s8772_s13 + $0x90] sm:$0xff] }
0x11d5   :  { %v5745_v13 = vsel %vm210_vm2, %v5743_v12, 0.0  ;;  %v5816_v12 = vld [vmem:[%s8772_s13 + $0x8] sm:$0xff] }
0x11d6   :  { %5746 = vadd.xlane.f32.xlu1 %v5745_v13  ;;  %v6643_v13 = vld [vmem:[%s8772_s13 + $0x88] sm:$0xff] }
0x125d   :  { %v5750_v14 = vpop.xlane.xlu0 %5749 }
0x125e   :  { %v5752_v15 = vmul.f32 0.03125, %v5750_v14  ;;  %v5815_v14 = vld [vmem:[%s8772_s13] sm:$0xff] }
0x125f   :  { %v5747_v16 = vpop.xlane.xlu1 %5746 }
0x1260   :  { %v5754_v21 = vadd.f32 1e-05, %v5752_v15  ;;  %v5751_v22 = vmul.f32 0.03125, %v5747_v16  ;;  %v6642_v16 = vld [vmem:[%s8772_s13 + $0x80] sm:$0xff] }
0x1262   :  { %7567 = vrsqrt.f32 %v5754_v21  ;;  %v5753_v26 = vadd.f32 1e-05, %v5751_v22 }
0x1264   :  { %7569 = vrsqrt.f32 %v5753_v26 }
0x126f   :  { %v7568_v20 = vpop.eup %7567 }
0x1270   :  { %v5758_v24 = vmul.f32 %v7568_v20, %v5742_v2  ;;  %v6645_v2 = vld [vmem:[%s8772_s13 + $0x98] sm:$0xff] }
0x1271   :  { %v7570_v27 = vpop.eup %7569  ;;  %v6655_v20 = vld [vmem:[%s8772_s13 + $0xd8] sm:$0xff] }
0x1272   :  { %v5764_v28 = vmul.f32 %v5762_v23, %v5758_v24  ;;  %v5757_v55 = vmul.f32 %v7570_v27, %v5741_v4  ;;  %v6654_v27 = vld [vmem:[%s8772_s13 + $0xd0] sm:$0xff] }
0x1274   :  { %v5770_v54 = vadd.f32 %v5768_v25, %v5764_v28  ;;  %v5763_v30 = vmul.f32 %v5762_v23, %v5757_v55  ;;  %v6640_v23 = vld [vmem:[%s8772_s13 + $0x78] sm:$0xff]  ;;  %v6638_v28 = vld [vmem:[%s8772_s13 + $0x68] sm:$0xff] }
0x1275   :  { %v6653_v55 = vld [vmem:[%s8772_s13 + $0xc8] sm:$0xff] }
0x1276   :  { %v5776_v31 = vsel %vm210_vm2, %v5770_v54, 0.0  ;;  %v5769_v32 = vadd.f32 %v5768_v25, %v5763_v30  ;;  %v6639_v25 = vld [vmem:[%s8772_s13 + $0x70] sm:$0xff] }
0x1277   :  { %5777 = vadd.xlane.f32.xlu0 %v5776_v31  ;;  %v6652_v31 = vld [vmem:[%s8772_s13 + $0xc0] sm:$0xff] }
0x1278   :  { %v5773_v35 = vsel %vm210_vm2, %v5769_v32, 0.0 }
0x1279   :  { %5774 = vadd.xlane.f32.xlu1 %v5773_v35 }
0x1300   :  { %v5778_v38 = vpop.xlane.xlu0 %5777 }
0x1301   :  { %v5780_v8 = vmul.f32 0.03125, %v5778_v38 }
0x1302   :  { %v5775_v39 = vpop.xlane.xlu1 %5774 }
0x1303   :  { %v5782_v42 = vsub.f32 %v5770_v54, %v5780_v8  ;;  %v5779_v43 = vmul.f32 0.03125, %v5775_v39  ;;  %v6637_v54 = vld [vmem:[%s8772_s13 + $0x60] sm:$0xff]  ;;  %v6650_v8 = vld [vmem:[%s8772_s13 + $0xb8] sm:$0xff] }
0x1305   :  { %v5781_v11 = vsub.f32 %v5769_v32, %v5779_v43  ;;  %v5784_v33 = vmul.f32 %v5782_v42, %v5782_v42  ;;  %v6649_v43 = vld [vmem:[%s8772_s13 + $0xb0] sm:$0xff] }
0x1307   :  { %v5788_v9 = vsel %vm210_vm2, %v5784_v33, 0.0  ;;  %v5783_v37 = vmul.f32 %v5781_v11, %v5781_v11 }
0x1308   :  { %5789 = vadd.xlane.f32.xlu0 %v5788_v9  ;;  %v6647_v9 = vld [vmem:[%s8772_s13 + $0xa0] sm:$0xff] }
0x1309   :  { %v5785_v18 = vsel %vm210_vm2, %v5783_v37, 0.0 }
0x130a   :  { %5786 = vadd.xlane.f32.xlu1 %v5785_v18  ;;  %v6660_v18 = vld [vmem:[%s8772_s13 + $0xf8] sm:$0xff] }
0x1391   :  { %v5790_v52 = vpop.xlane.xlu0 %5789 }
0x1392   :  { %v5792_v49 = vmul.f32 0.03125, %v5790_v52 }
0x1393   :  { %v5787_v56 = vpop.xlane.xlu1 %5786 }
0x1394   :  { %v5794_v34 = vadd.f32 1e-05, %v5792_v49  ;;  %v5791_v57 = vmul.f32 0.03125, %v5787_v56 }
0x1396   :  { %7571 = vrsqrt.f32 %v5794_v34  ;;  %v5793_v40 = vadd.f32 1e-05, %v5791_v57 }
0x1398   :  { %7573 = vrsqrt.f32 %v5793_v40 }
0x13a3   :  { %v7572_v29 = vpop.eup %7571 }
0x13a4   :  { %v5798_v59 = vmul.f32 %v7572_v29, %v5782_v42 }
0x13a5   :  { %v7574_v53 = vpop.eup %7573 }
0x13a6   :  { %v5806_v61 = vmul.f32 %v6624_v45, %v5798_v59  ;;  %v5797_v17 = vmul.f32 %v7574_v53, %v5781_v11  ;;  %v6648_v11 = vld [vmem:[%s8772_s13 + $0xa8] sm:$0xff] }
0x13a8   :  { %v8611_v44 = vadd.f32 %v6625_v60, %v5806_v61  ;;  %v5805_v46 = vmul.f32 %v6624_v45, %v5797_v17 }
0x13aa   :  { %v8613_v62 = vadd.f32 %v6625_v60, %v5805_v46  ;;  %v5981_v19 = vrot.slane %v8611_v44, 1  ;;  %v5901_v15 = vrot.slane %v8611_v44, 7  ;;  %v6143_v22 = vrot.slane %v8611_v44, 3 }
0x13ab   :  { %v6062_v35 = vrot.slane %v8611_v44, 2  ;;  %v6305_v38 = vrot.slane %v8611_v44, 5  ;;  %v6224_v37 = vrot.slane %v8611_v44, 4  ;;  %v6386_v6 = vrot.slane %v8611_v44, 6 }
0x13ac   :  { %v5826_v63 = vrot.slane %v8613_v62, 1  ;;  %v5980_v0 = vrot.slane %v8613_v62, 2  ;;  %v6142_v21 = vrot.slane %v8613_v62, 4  ;;  %v5902_v26 = vsel %vm5827_vm5, %v5901_v15, %v8613_v62 }
0x13ad   :  { %v6061_v30 = vrot.slane %v8613_v62, 3  ;;  %v6304_v32 = vrot.slane %v8613_v62, 6  ;;  %v6223_v33 = vrot.slane %v8613_v62, 5  ;;  %v6385_v58 = vrot.slane %v8613_v62, 7 }
0x13ae   :  { %v5828_v3 = vsel %vm5827_vm5, %v8611_v44, %v5826_v63  ;;  %v5982_v4 = vsel %vm5827_vm5, %v5981_v19, %v5980_v0  ;;  %v6144_v24 = vsel %vm5827_vm5, %v6143_v22, %v6142_v21 }
0x13af   :  { %7407 = vmatmul.mubr.msk.f32.vlgmr.msra.gmra.mxu1 %vm210_vm2, %v5828_v3  ;;  %7429 = vmatmul.mubr.msk.f32.vlgmr.msra.gmra.mxu0 %vm210_vm2, %v5982_v4  ;;  %v6063_v39 = vsel %vm5827_vm5, %v6062_v35, %v6061_v30  ;;  %v6306_v42 = vsel %vm5827_vm5, %v6305_v38, %v6304_v32  ;;  %v6225_v41 = vsel %vm5827_vm5, %v6224_v37, %v6223_v33 }
0x13b0   :  { %7410 = vmatpush3.msra.mxu1 %v5818_v1  ;;  %7443 = vmatpush3.msra.mxu0 %v6645_v2  ;;  %v6387_v7 = vsel %vm5827_vm5, %v6386_v6, %v6385_v58  ;;  %v6662_v1 = vld [vmem:[%s8773_s14] ss:$0 sm:$0xff] }
0x13b1   :  { %7411 = vmatprep.subr.mxu1 %v7597_v5  ;;  %7444 = vmatprep.subr.mxu0 %v7597_v5 }
0x13b2   :  { %7412 = vmatpush3.msra.mxu1 %v5817_v10  ;;  %7445 = vmatpush3.msra.mxu0 %v6644_v36 }
0x13b3   :  { %7413 = vmatprep.subr.mxu1 %v7597_v5  ;;  %7446 = vmatprep.subr.mxu0 %v7597_v5 }
0x13b4   :  { %7414 = vmatpush3.msra.mxu1 %v5816_v12  ;;  %7447 = vmatpush3.msra.mxu0 %v6643_v13 }
0x13b5   :  { %7415 = vmatprep.subr.mxu1 %v7597_v5  ;;  %7448 = vmatprep.subr.mxu0 %v7597_v5 }
0x13b6   :  { %7416 = vmatpush3.msra.mxu1 %v5815_v14  ;;  %7417 = vmatprep.mubr.msk.f32.mxu1 %vm7598_vm1, %v7597_v5 }
0x13b7   :  { %7449 = vmatpush3.msra.mxu0 %v6642_v16  ;;  %7450 = vmatprep.mubr.msk.f32.mxu0 %vm7598_vm1, %v7597_v5 }
0x13b8   :  { %7418 = vmatmul.mubr.msk.f32.vlgmr.msra.gmra.mxu1 %vm210_vm2, %v5902_v26  ;;  %7431 = vmatprep.subr.mxu1 %v7597_v5 }
0x13b9   :  { %7451 = vmatmul.mubr.msk.f32.vlgmr.msra.gmra.mxu0 %vm210_vm2, %v6144_v24  ;;  %7464 = vmatprep.subr.mxu0 %v7597_v5 }
0x13ba   :  { %7432 = vmatpush3.msra.mxu1 %v6640_v23  ;;  %7465 = vmatpush3.msra.mxu0 %v6655_v20 }
0x13bb   :  { %7433 = vmatprep.subr.mxu1 %v7597_v5  ;;  %7466 = vmatprep.subr.mxu0 %v7597_v5 }
0x13bc   :  { %7434 = vmatpush3.msra.mxu1 %v6639_v25  ;;  %7467 = vmatpush3.msra.mxu0 %v6654_v27 }
0x13bd   :  { %7435 = vmatprep.subr.mxu1 %v7597_v5  ;;  %7468 = vmatprep.subr.mxu0 %v7597_v5 }
0x13be   :  { %7436 = vmatpush3.msra.mxu1 %v6638_v28  ;;  %7469 = vmatpush3.msra.mxu0 %v6653_v55 }
0x13bf   :  { %7437 = vmatprep.subr.mxu1 %v7597_v5  ;;  %7470 = vmatprep.subr.mxu0 %v7597_v5 }
0x13c0   :  { %7438 = vmatpush3.msra.mxu1 %v6637_v54  ;;  %7439 = vmatprep.mubr.msk.f32.mxu1 %vm7598_vm1, %v7597_v5 }
0x13c1   :  { %7471 = vmatpush3.msra.mxu0 %v6652_v31  ;;  %7472 = vmatprep.mubr.msk.f32.mxu0 %vm7598_vm1, %v7597_v5 }
0x13c2   :  { %7440 = vmatmul.mubr.msk.f32.vlgmr.msra.gmra.mxu1 %vm210_vm2, %v6063_v39  ;;  %7453 = vmatprep.subr.mxu1 %v7597_v5 }
0x13c3   :  { %7473 = vmatmul.mubr.msk.f32.vlgmr.msra.gmra.mxu0 %vm210_vm2, %v6306_v42  ;;  %7454 = vmatpush3.msra.mxu1 %v6650_v8 }
0x13c4   :  { %7455 = vmatprep.subr.mxu1 %v7597_v5  ;;  %7461 = vmatprep.mubr.msk.f32.mxu1 %vm7598_vm1, %v7597_v5 }
0x13c5   :  { %7456 = vmatpush3.msra.mxu1 %v6649_v43 }
0x13c6   :  { %7457 = vmatprep.subr.mxu1 %v7597_v5 }
0x13c7   :  { %7458 = vmatpush3.msra.mxu1 %v6648_v11 }
0x13c8   :  { %7459 = vmatprep.subr.mxu1 %v7597_v5 }
0x13c9   :  { %7460 = vmatpush3.msra.mxu1 %v6647_v9 }
0x13ca   :  { %7462 = vmatmul.mubr.msk.f32.vlgmr.msra.gmra.mxu1 %vm210_vm2, %v6225_v41  ;;  %7475 = vmatprep.subr.mxu1 %v7597_v5 }
0x13cb   :  { %7476 = vmatpush3.msra.mxu1 %v6660_v18  ;;  %7483 = vmatprep.mubr.msk.f32.mxu1 %vm7598_vm1, %v7597_v5 }
0x13cc   :  { %7477 = vmatprep.subr.mxu1 %v7597_v5 }
0x13cd   :  { %7478 = vmatpush3.msra.mxu1 %v6659_v47 }
0x13ce   :  { %7479 = vmatprep.subr.mxu1 %v7597_v5 }
0x13cf   :  { %7480 = vmatpush3.msra.mxu1 %v6658_v50 }
0x13d0   :  { %7481 = vmatprep.subr.mxu1 %v7597_v5 }
0x13d1   :  { %7482 = vmatpush3.msra.mxu1 %v6657_v51 }
0x13d2   :  { %7484 = vmatmul.mubr.msk.f32.vlgmr.msra.gmra.mxu1 %vm210_vm2, %v6387_v7 }
0x146f   :  { %v5897_v48 = vpop.f32.mrf.mxu1  ;;  %v6051_v52 = vpop.f32.mrf.mxu0 }
0x1471   :  { %v7408_v49 = vpop.f32.mrf.mxu1  ;;  %v7430_v56 = vpop.f32.mrf.mxu0 }
0x1478   :  { %v5971_v34 = vpop.f32.mrf.mxu1 }
0x1479   :  { %v6213_v57 = vpop.f32.mrf.mxu0  ;;  %v5972_v45 = vadd.f32 %v5971_v34, %v5897_v48 }
0x147a   :  { %v7419_v40 = vpop.f32.mrf.mxu1 }
0x147b   :  { %v7452_v29 = vpop.f32.mrf.mxu0  ;;  %v6055_v61 = vadd.f32 %v6051_v52, %v5972_v45 }
0x1482   :  { %v6132_v59 = vpop.f32.mrf.mxu1 }
0x1483   :  { %v6375_v53 = vpop.f32.mrf.mxu0  ;;  %v6136_v5 = vadd.f32 %v6132_v59, %v6055_v61 }
0x1484   :  { %v7441_v60 = vpop.f32.mrf.mxu1 }
0x1485   :  { %v7474_v17 = vpop.f32.mrf.mxu0  ;;  %v6217_v46 = vadd.f32 %v6213_v57, %v6136_v5 }
0x148a   :  { %v6294_v44 = vpop.f32.mrf.mxu1 }
0x148b   :  { %v6298_v63 = vadd.f32 %v6294_v44, %v6217_v46 }
0x148c   :  { %v7463_v62 = vpop.f32.mrf.mxu1 }
0x148d   :  { %v6379_v0 = vadd.f32 %v6375_v53, %v6298_v63 }
0x1492   :  { %v6456_v19 = vpop.f32.mrf.mxu1 }
0x1493   :  { %v6460_v2 = vadd.f32 %v6456_v19, %v6379_v0 }
0x1494   :  { %v7485_v3 = vpop.f32.mrf.mxu1 }
0x1495   :  { %v6468_v4 = vadd.f32 %v6662_v1, %v6460_v2 }
0x1497   :  { %6470 = vst.msk [vmem:[#allocation2] sm:$0x3] %vm6469_vm6, %v6468_v4 }
0x1498   :  { %7586 = shalt.err (!%p7583_p4)
}
0x1499   :  { %6480 = dma.vmem_to_hbm [thread:$0]  %s6478_s8, 32, %s8774_s15, [#allocation3]  }
0x149a   :  { %7595 = dma.done.wait [#allocation3], 32  }
0x149b   :  { %7596 = vsyncadd [#allocation3], 4294967264 }
0x149c   :  { %6484 = vsyncpa [#allocation3], 1 }

</bundles_post_ra>
